<compile_context>
chip_gen: v7x
topology: tpu7x:2x2x1
jax: 0.10.0
libtpu: 0.0.40
codegen_flags: <defaults>
</compile_context>

<pallas_src>
import jax
import jax.numpy as jnp
from jax.experimental import pallas as pl
from jax.experimental.pallas import tpu as pltpu

NUM_NODE_FEATURES = 33
F_PAD = 40                 # 33 -> next multiple of 8 (clean sublane packing)
DIM_H = 32
D1, D1_PAD = 50, 56        # lin1 out, padded to multiple of 8
D2, D2_PAD = 20, 24        # lin2 out, padded to multiple of 8
NUM_CLASSES = 7
C_PAD = 128                # lane-dense class dim
NEG = -1e30                # padded-class logit bias (kills them in log_softmax)

# ---- packed weight buffer layout (rows; all offsets/extents are multiples of 8) ----
O_W1A = 0      # [F_PAD, 32]   conv1 lin1 (BN folded)
O_W1B = 40     # [32, 32]      conv1 lin2
O_W2A = 72     # [32, 32]
O_W2B = 104    # [32, 32]
O_W3A = 136    # [32, 32]
O_W3B = 168    # [32, 32]
O_WL1 = 200    # [96, D1_PAD]
O_WL2 = 296    # [D1_PAD, D2_PAD]
O_WL3 = 352    # [D2_PAD, C_PAD]
W_ROWS, W_COLS = 376, 128

# ---- packed bias buffer rows ----
R_B1A, R_B1B, R_B2A, R_B2B, R_B3A, R_B3B = 0, 1, 2, 3, 4, 5
R_BL1, R_BL2, R_BL3 = 6, 7, 8
B_ROWS = 16


def ginnet_kernel(x_ref, a_ref, p_ref, w_ref, b_ref, out_ref):
    A = a_ref[...]                      # [N, N]   bf16 (adjacency + (1+eps)*I)
    P = p_ref[...]                      # [BP, N]  bf16 (one-hot global_add_pool)

    def wslice(off, rows, cols):
        return w_ref[off:off + rows, 0:cols]            # static slice, bf16

    def bias(row, cols):
        return b_ref[row:row + 1, 0:cols]               # static slice, f32

    def gin_layer(h_bf16, wa_off, wa_rows, wb_off, ba_row, bb_row):
        # GINConv = MLP(A_hat @ h); Linear applied before aggregation (both linear)
        # so the N x N matmul contracts over DIM_H lanes. BN folded into Wa/ba.
        z = jnp.dot(h_bf16, wslice(wa_off, wa_rows, DIM_H),
                    preferred_element_type=jnp.float32)
        z = jnp.dot(A, z.astype(jnp.bfloat16),
                    preferred_element_type=jnp.float32) + bias(ba_row, DIM_H)
        z = jnp.maximum(z, 0.0)
        z = jnp.dot(z.astype(jnp.bfloat16), wslice(wb_off, DIM_H, DIM_H),
                    preferred_element_type=jnp.float32) + bias(bb_row, DIM_H)
        return jnp.maximum(z, 0.0).astype(jnp.bfloat16)

    h1 = gin_layer(x_ref[...], O_W1A, F_PAD, O_W1B, R_B1A, R_B1B)
    h2 = gin_layer(h1, O_W2A, DIM_H, O_W2B, R_B2A, R_B2B)
    h3 = gin_layer(h2, O_W3A, DIM_H, O_W3B, R_B3A, R_B3B)

    # one pooling matmul over the concatenated [N, 96] features, one un-split lin1
    hcat = jnp.concatenate([h1, h2, h3], axis=1)                       # [N, 96] bf16
    g = jnp.dot(P, hcat, preferred_element_type=jnp.float32)           # [BP, 96] f32

    h = jnp.dot(g.astype(jnp.bfloat16), wslice(O_WL1, 3 * DIM_H, D1_PAD),
                preferred_element_type=jnp.float32) + bias(R_BL1, D1_PAD)
    h = jnp.maximum(h, 0.0)
    # dropout(p=0.1) is identity at inference
    h = jnp.dot(h.astype(jnp.bfloat16), wslice(O_WL2, D1_PAD, D2_PAD),
                preferred_element_type=jnp.float32) + bias(R_BL2, D2_PAD)
    h = jnp.maximum(h, 0.0)
    logits = jnp.dot(h.astype(jnp.bfloat16), wslice(O_WL3, D2_PAD, C_PAD),
                     preferred_element_type=jnp.float32) + bias(R_BL3, C_PAD)

    # log_softmax (f32); padded class lanes hold ~-1e30 -> exp underflows to 0
    m = jnp.max(logits, axis=1, keepdims=True)
    s = logits - m
    lse = jnp.log(jnp.sum(jnp.exp(s), axis=1, keepdims=True))

    # single fused lane-dense store: [:, :128] logits, [:, 128:] log_softmax
    out_ref[...] = jnp.concatenate([logits, s - lse], axis=1)


@jax.jit
def ginnet_forward(x, a_hat, pool, wpack, bpack):
    n = x.shape[0]
    b = pool.shape[0]
    bp = ((b + 7) // 8) * 8

    xp = jnp.zeros((n, F_PAD), jnp.bfloat16).at[:, :NUM_NODE_FEATURES].set(
        x.astype(jnp.bfloat16))
    pp = jnp.zeros((bp, n), jnp.bfloat16).at[:b, :].set(pool.astype(jnp.bfloat16))

    vmem = pl.BlockSpec(memory_space=pltpu.MemorySpace.VMEM)
    out = pl.pallas_call(
        ginnet_kernel,
        out_shape=jax.ShapeDtypeStruct((bp, 2 * C_PAD), jnp.float32),
        in_specs=[vmem] * 5,
        out_specs=vmem,
    )(xp, a_hat.astype(jnp.bfloat16), pp, wpack, bpack)

    logits = out[:b, :NUM_CLASSES]
    log_probs = out[:b, C_PAD:C_PAD + NUM_CLASSES]
    return logits, log_probs


def init_params(key):
    """Deterministic synthetic params, PyTorch-module shapes (weights as [din, dout])."""
    keys = jax.random.split(key, 12)

    def lin(k, din, dout):
        kw, kb = jax.random.split(k)
        return (jax.random.normal(kw, (din, dout), jnp.float32) * 0.1,
                jax.random.normal(kb, (dout,), jnp.float32) * 0.1)

    convs = []
    dims_in = [NUM_NODE_FEATURES, DIM_H, DIM_H]
    ki = 0
    for c in range(3):
        wa, ba = lin(keys[ki], dims_in[c], DIM_H); ki += 1
        wb, bb = lin(keys[ki], DIM_H, DIM_H); ki += 1
        convs.append(dict(
            wa=wa, ba=ba, wb=wb, bb=bb,
            # BatchNorm1d default init, eval mode
            gamma=jnp.ones((DIM_H,), jnp.float32),
            beta=jnp.zeros((DIM_H,), jnp.float32),
            mean=jnp.zeros((DIM_H,), jnp.float32),
            var=jnp.ones((DIM_H,), jnp.float32),
        ))
    wl1, bl1 = lin(keys[ki], 3 * DIM_H, D1); ki += 1
    wl2, bl2 = lin(keys[ki], D1, D2); ki += 1
    wl3, bl3 = lin(keys[ki], D2, NUM_CLASSES); ki += 1
    return dict(conv=convs, lin1=(wl1, bl1), lin2=(wl2, bl2), lin3=(wl3, bl3))


def pack_params(raw, bn_eps=1e-5):
    """Fold BN into each GIN MLP's first Linear and pack everything into two buffers."""
    W = jnp.zeros((W_ROWS, W_COLS), jnp.float32)
    B = jnp.zeros((B_ROWS, W_COLS), jnp.float32)

    wa_off = [(O_W1A, NUM_NODE_FEATURES), (O_W2A, DIM_H), (O_W3A, DIM_H)]
    wb_off = [O_W1B, O_W2B, O_W3B]
    for i, c in enumerate(raw["conv"]):
        scale = c["gamma"] / jnp.sqrt(c["var"] + bn_eps)
        shift = c["beta"] - c["mean"] * scale
        wa = c["wa"] * scale[None, :]                 # BN folded into Linear
        ba = c["ba"] * scale + shift
        off, din = wa_off[i]
        W = W.at[off:off + din, :DIM_H].set(wa)
        W = W.at[wb_off[i]:wb_off[i] + DIM_H, :DIM_H].set(c["wb"])
        B = B.at[2 * i, :DIM_H].set(ba)
        B = B.at[2 * i + 1, :DIM_H].set(c["bb"])

    wl1, bl1 = raw["lin1"]
    wl2, bl2 = raw["lin2"]
    wl3, bl3 = raw["lin3"]
    W = W.at[O_WL1:O_WL1 + 3 * DIM_H, :D1].set(wl1)
    W = W.at[O_WL2:O_WL2 + D1, :D2].set(wl2)
    W = W.at[O_WL3:O_WL3 + D2, :NUM_CLASSES].set(wl3)
    B = B.at[R_BL1, :D1].set(bl1)
    B = B.at[R_BL2, :D2].set(bl2)
    B = B.at[R_BL3, :].set(NEG)                       # padded class lanes -> -inf-ish
    B = B.at[R_BL3, :NUM_CLASSES].set(bl3)
    return W.astype(jnp.bfloat16), B                  # weights bf16, biases f32


def reference_forward(x, a_hat, pool, raw, bn_eps=1e-5):
    """Pure-JAX f32 reference with the PyTorch eval-mode semantics."""
    hs = []
    h = x
    for c in raw["conv"]:
        scale = c["gamma"] / jnp.sqrt(c["var"] + bn_eps)
        shift = c["beta"] - c["mean"] * scale
        z = a_hat @ h
        z = z @ c["wa"] + c["ba"]
        z = z * scale + shift
        z = jnp.maximum(z, 0.0)
        z = z @ c["wb"] + c["bb"]
        h = jnp.maximum(z, 0.0)
        hs.append(h)
    g = jnp.concatenate([pool @ hs[0], pool @ hs[1], pool @ hs[2]], axis=1)
    wl1, bl1 = raw["lin1"]
    wl2, bl2 = raw["lin2"]
    wl3, bl3 = raw["lin3"]
    h = jnp.maximum(g @ wl1 + bl1, 0.0)
    h = jnp.maximum(h @ wl2 + bl2, 0.0)
    logits = h @ wl3 + bl3
    return logits, jax.nn.log_softmax(logits, axis=1)


if __name__ == "__main__":
    key = jax.random.PRNGKey(0)
    kx, kp = jax.random.split(key)

    B = 8            # graphs in the batch
    npg = 16         # nodes per graph
    N = B * npg      # 128 total nodes -> fills a native MXU tile

    x = jax.random.normal(kx, (N, NUM_NODE_FEATURES), jnp.float32)

    # deterministic undirected chain graph within each graph
    src, dst = [], []
    for g in range(B):
        base = g * npg
        for i in range(npg - 1):
            src += [base + i, base + i + 1]
            dst += [base + i + 1, base + i]
    edge_index = jnp.array([src, dst], dtype=jnp.int32)        # [2, E]
    batch = jnp.repeat(jnp.arange(B, dtype=jnp.int32), npg)    # [N]

    # Dense message-passing operator: A[t, s] = #edges s->t ; add (1+eps)*I (GIN eps=0)
    eps = 0.0
    A = jnp.zeros((N, N), jnp.float32).at[edge_index[1], edge_index[0]].add(1.0)
    a_hat = A + (1.0 + eps) * jnp.eye(N, dtype=jnp.float32)

    # global_add_pool as a one-hot segment matrix
    pool = (batch[None, :] == jnp.arange(B, dtype=jnp.int32)[:, None]).astype(jnp.float32)

    raw = init_params(kp)
    wpack, bpack = pack_params(raw)

    logits, log_probs = jax.block_until_ready(
        ginnet_forward(x, a_hat, pool, wpack, bpack))

    assert logits.shape == (B, NUM_CLASSES) and log_probs.shape == (B, NUM_CLASSES)

    # loose tolerance: kernel uses bf16 MXU operands with f32 accumulation
    ref_logits, ref_log_probs = reference_forward(x, a_hat, pool, raw)
    assert float(jnp.max(jnp.abs(logits - ref_logits))) < 0.25
    assert float(jnp.max(jnp.abs(log_probs - ref_log_probs))) < 0.25

    print("KERNEL_OK")
</pallas_src>

<mosaic_0001>
module attributes {stable_mosaic.version = 11 : i64} {
  func.func @ginnet_kernel(%arg0: memref<128x40xbf16, #tpu.memory_space<vmem>>, %arg1: memref<128x128xbf16, #tpu.memory_space<vmem>>, %arg2: memref<8x128xbf16, #tpu.memory_space<vmem>>, %arg3: memref<376x128xbf16, #tpu.memory_space<vmem>>, %arg4: memref<16x128xf32, #tpu.memory_space<vmem>>, %arg5: memref<8x256xf32, #tpu.memory_space<vmem>>) attributes {dimension_semantics = [], scalar_prefetch = 0 : i64, scratch_operands = 0 : i64, tpu.core_type = #tpu.core_type<tc>} {
    %c0 = arith.constant 0 : index
    %c0_0 = arith.constant 0 : index
    %0 = vector.load %arg1[%c0, %c0_0] : memref<128x128xbf16, #tpu.memory_space<vmem>>, vector<128x128xbf16>
    %c0_1 = arith.constant 0 : index
    %c0_2 = arith.constant 0 : index
    %1 = vector.load %arg2[%c0_1, %c0_2] : memref<8x128xbf16, #tpu.memory_space<vmem>>, vector<8x128xbf16>
    %c0_3 = arith.constant 0 : index
    %c0_4 = arith.constant 0 : index
    %2 = vector.load %arg0[%c0_3, %c0_4] : memref<128x40xbf16, #tpu.memory_space<vmem>>, vector<128x40xbf16>
    %c0_5 = arith.constant 0 : index
    %c0_6 = arith.constant 0 : index
    %3 = vector.load %arg3[%c0_5, %c0_6] : memref<376x128xbf16, #tpu.memory_space<vmem>>, vector<40x32xbf16>
    %cst = arith.constant dense<0.000000e+00> : vector<128x32xf32>
    %4 = tpu.matmul %2, %3, %cst {dimension_numbers = #tpu.dot_dimension_numbers<[1], [0], [0], [1], [0, 0, 1, 1], [], []>} : vector<128x40xbf16>, vector<40x32xbf16>, vector<128x32xf32> -> vector<128x32xf32>
    %5 = arith.truncf %4 : vector<128x32xf32> to vector<128x32xbf16>
    %cst_7 = arith.constant dense<0.000000e+00> : vector<128x32xf32>
    %6 = tpu.matmul %0, %5, %cst_7 {dimension_numbers = #tpu.dot_dimension_numbers<[1], [0], [0], [1], [0, 0, 1, 1], [], []>} : vector<128x128xbf16>, vector<128x32xbf16>, vector<128x32xf32> -> vector<128x32xf32>
    %c0_8 = arith.constant 0 : index
    %c0_9 = arith.constant 0 : index
    %7 = vector.load %arg4[%c0_8, %c0_9] : memref<16x128xf32, #tpu.memory_space<vmem>>, vector<1x32xf32>
    %8 = vector.broadcast %7 : vector<1x32xf32> to vector<128x32xf32>
    %9 = arith.addf %6, %8 : vector<128x32xf32>
    %cst_10 = arith.constant 0.000000e+00 : f32
    %10 = vector.broadcast %cst_10 : f32 to vector<128x32xf32>
    %11 = arith.maximumf %9, %10 : vector<128x32xf32>
    %12 = arith.truncf %11 : vector<128x32xf32> to vector<128x32xbf16>
    %c40 = arith.constant 40 : index
    %c0_11 = arith.constant 0 : index
    %13 = vector.load %arg3[%c40, %c0_11] : memref<376x128xbf16, #tpu.memory_space<vmem>>, vector<32x32xbf16>
    %cst_12 = arith.constant dense<0.000000e+00> : vector<128x32xf32>
    %14 = tpu.matmul %12, %13, %cst_12 {dimension_numbers = #tpu.dot_dimension_numbers<[1], [0], [0], [1], [0, 0, 1, 1], [], []>} : vector<128x32xbf16>, vector<32x32xbf16>, vector<128x32xf32> -> vector<128x32xf32>
    %c1 = arith.constant 1 : index
    %c0_13 = arith.constant 0 : index
    %15 = vector.load %arg4[%c1, %c0_13] : memref<16x128xf32, #tpu.memory_space<vmem>>, vector<1x32xf32>
    %16 = vector.broadcast %15 : vector<1x32xf32> to vector<128x32xf32>
    %17 = arith.addf %14, %16 : vector<128x32xf32>
    %cst_14 = arith.constant 0.000000e+00 : f32
    %18 = vector.broadcast %cst_14 : f32 to vector<128x32xf32>
    %19 = arith.maximumf %17, %18 : vector<128x32xf32>
    %20 = arith.truncf %19 : vector<128x32xf32> to vector<128x32xbf16>
    %c72 = arith.constant 72 : index
    %c0_15 = arith.constant 0 : index
    %21 = vector.load %arg3[%c72, %c0_15] : memref<376x128xbf16, #tpu.memory_space<vmem>>, vector<32x32xbf16>
    %cst_16 = arith.constant dense<0.000000e+00> : vector<128x32xf32>
    %22 = tpu.matmul %20, %21, %cst_16 {dimension_numbers = #tpu.dot_dimension_numbers<[1], [0], [0], [1], [0, 0, 1, 1], [], []>} : vector<128x32xbf16>, vector<32x32xbf16>, vector<128x32xf32> -> vector<128x32xf32>
    %23 = arith.truncf %22 : vector<128x32xf32> to vector<128x32xbf16>
    %cst_17 = arith.constant dense<0.000000e+00> : vector<128x32xf32>
    %24 = tpu.matmul %0, %23, %cst_17 {dimension_numbers = #tpu.dot_dimension_numbers<[1], [0], [0], [1], [0, 0, 1, 1], [], []>} : vector<128x128xbf16>, vector<128x32xbf16>, vector<128x32xf32> -> vector<128x32xf32>
    %c2 = arith.constant 2 : index
    %c0_18 = arith.constant 0 : index
    %25 = vector.load %arg4[%c2, %c0_18] : memref<16x128xf32, #tpu.memory_space<vmem>>, vector<1x32xf32>
    %26 = vector.broadcast %25 : vector<1x32xf32> to vector<128x32xf32>
    %27 = arith.addf %24, %26 : vector<128x32xf32>
    %cst_19 = arith.constant 0.000000e+00 : f32
    %28 = vector.broadcast %cst_19 : f32 to vector<128x32xf32>
    %29 = arith.maximumf %27, %28 : vector<128x32xf32>
    %30 = arith.truncf %29 : vector<128x32xf32> to vector<128x32xbf16>
    %c104 = arith.constant 104 : index
    %c0_20 = arith.constant 0 : index
    %31 = vector.load %arg3[%c104, %c0_20] : memref<376x128xbf16, #tpu.memory_space<vmem>>, vector<32x32xbf16>
    %cst_21 = arith.constant dense<0.000000e+00> : vector<128x32xf32>
    %32 = tpu.matmul %30, %31, %cst_21 {dimension_numbers = #tpu.dot_dimension_numbers<[1], [0], [0], [1], [0, 0, 1, 1], [], []>} : vector<128x32xbf16>, vector<32x32xbf16>, vector<128x32xf32> -> vector<128x32xf32>
    %c3 = arith.constant 3 : index
    %c0_22 = arith.constant 0 : index
    %33 = vector.load %arg4[%c3, %c0_22] : memref<16x128xf32, #tpu.memory_space<vmem>>, vector<1x32xf32>
    %34 = vector.broadcast %33 : vector<1x32xf32> to vector<128x32xf32>
    %35 = arith.addf %32, %34 : vector<128x32xf32>
    %cst_23 = arith.constant 0.000000e+00 : f32
    %36 = vector.broadcast %cst_23 : f32 to vector<128x32xf32>
    %37 = arith.maximumf %35, %36 : vector<128x32xf32>
    %38 = arith.truncf %37 : vector<128x32xf32> to vector<128x32xbf16>
    %c136 = arith.constant 136 : index
    %c0_24 = arith.constant 0 : index
    %39 = vector.load %arg3[%c136, %c0_24] : memref<376x128xbf16, #tpu.memory_space<vmem>>, vector<32x32xbf16>
    %cst_25 = arith.constant dense<0.000000e+00> : vector<128x32xf32>
    %40 = tpu.matmul %38, %39, %cst_25 {dimension_numbers = #tpu.dot_dimension_numbers<[1], [0], [0], [1], [0, 0, 1, 1], [], []>} : vector<128x32xbf16>, vector<32x32xbf16>, vector<128x32xf32> -> vector<128x32xf32>
    %41 = arith.truncf %40 : vector<128x32xf32> to vector<128x32xbf16>
    %cst_26 = arith.constant dense<0.000000e+00> : vector<128x32xf32>
    %42 = tpu.matmul %0, %41, %cst_26 {dimension_numbers = #tpu.dot_dimension_numbers<[1], [0], [0], [1], [0, 0, 1, 1], [], []>} : vector<128x128xbf16>, vector<128x32xbf16>, vector<128x32xf32> -> vector<128x32xf32>
    %c4 = arith.constant 4 : index
    %c0_27 = arith.constant 0 : index
    %43 = vector.load %arg4[%c4, %c0_27] : memref<16x128xf32, #tpu.memory_space<vmem>>, vector<1x32xf32>
    %44 = vector.broadcast %43 : vector<1x32xf32> to vector<128x32xf32>
    %45 = arith.addf %42, %44 : vector<128x32xf32>
    %cst_28 = arith.constant 0.000000e+00 : f32
    %46 = vector.broadcast %cst_28 : f32 to vector<128x32xf32>
    %47 = arith.maximumf %45, %46 : vector<128x32xf32>
    %48 = arith.truncf %47 : vector<128x32xf32> to vector<128x32xbf16>
    %c168 = arith.constant 168 : index
    %c0_29 = arith.constant 0 : index
    %49 = vector.load %arg3[%c168, %c0_29] : memref<376x128xbf16, #tpu.memory_space<vmem>>, vector<32x32xbf16>
    %cst_30 = arith.constant dense<0.000000e+00> : vector<128x32xf32>
    %50 = tpu.matmul %48, %49, %cst_30 {dimension_numbers = #tpu.dot_dimension_numbers<[1], [0], [0], [1], [0, 0, 1, 1], [], []>} : vector<128x32xbf16>, vector<32x32xbf16>, vector<128x32xf32> -> vector<128x32xf32>
    %c5 = arith.constant 5 : index
    %c0_31 = arith.constant 0 : index
    %51 = vector.load %arg4[%c5, %c0_31] : memref<16x128xf32, #tpu.memory_space<vmem>>, vector<1x32xf32>
    %52 = vector.broadcast %51 : vector<1x32xf32> to vector<128x32xf32>
    %53 = arith.addf %50, %52 : vector<128x32xf32>
    %cst_32 = arith.constant 0.000000e+00 : f32
    %54 = vector.broadcast %cst_32 : f32 to vector<128x32xf32>
    %55 = arith.maximumf %53, %54 : vector<128x32xf32>
    %56 = arith.truncf %55 : vector<128x32xf32> to vector<128x32xbf16>
    %57 = tpu.concatenate %20, %38, %56 in 1 : vector<128x32xbf16>, vector<128x32xbf16>, vector<128x32xbf16> -> vector<128x96xbf16>
    %cst_33 = arith.constant dense<0.000000e+00> : vector<8x96xf32>
    %58 = tpu.matmul %1, %57, %cst_33 {dimension_numbers = #tpu.dot_dimension_numbers<[1], [0], [0], [1], [0, 0, 1, 1], [], []>} : vector<8x128xbf16>, vector<128x96xbf16>, vector<8x96xf32> -> vector<8x96xf32>
    %59 = arith.truncf %58 : vector<8x96xf32> to vector<8x96xbf16>
    %c200 = arith.constant 200 : index
    %c0_34 = arith.constant 0 : index
    %60 = vector.load %arg3[%c200, %c0_34] : memref<376x128xbf16, #tpu.memory_space<vmem>>, vector<96x56xbf16>
    %cst_35 = arith.constant dense<0.000000e+00> : vector<8x56xf32>
    %61 = tpu.matmul %59, %60, %cst_35 {dimension_numbers = #tpu.dot_dimension_numbers<[1], [0], [0], [1], [0, 0, 1, 1], [], []>} : vector<8x96xbf16>, vector<96x56xbf16>, vector<8x56xf32> -> vector<8x56xf32>
    %c6 = arith.constant 6 : index
    %c0_36 = arith.constant 0 : index
    %62 = vector.load %arg4[%c6, %c0_36] : memref<16x128xf32, #tpu.memory_space<vmem>>, vector<1x56xf32>
    %63 = vector.broadcast %62 : vector<1x56xf32> to vector<8x56xf32>
    %64 = arith.addf %61, %63 : vector<8x56xf32>
    %cst_37 = arith.constant 0.000000e+00 : f32
    %65 = vector.broadcast %cst_37 : f32 to vector<8x56xf32>
    %66 = arith.maximumf %64, %65 : vector<8x56xf32>
    %67 = arith.truncf %66 : vector<8x56xf32> to vector<8x56xbf16>
    %c296 = arith.constant 296 : index
    %c0_38 = arith.constant 0 : index
    %68 = vector.load %arg3[%c296, %c0_38] : memref<376x128xbf16, #tpu.memory_space<vmem>>, vector<56x24xbf16>
    %cst_39 = arith.constant dense<0.000000e+00> : vector<8x24xf32>
    %69 = tpu.matmul %67, %68, %cst_39 {dimension_numbers = #tpu.dot_dimension_numbers<[1], [0], [0], [1], [0, 0, 1, 1], [], []>} : vector<8x56xbf16>, vector<56x24xbf16>, vector<8x24xf32> -> vector<8x24xf32>
    %c7 = arith.constant 7 : index
    %c0_40 = arith.constant 0 : index
    %70 = vector.load %arg4[%c7, %c0_40] : memref<16x128xf32, #tpu.memory_space<vmem>>, vector<1x24xf32>
    %71 = vector.broadcast %70 : vector<1x24xf32> to vector<8x24xf32>
    %72 = arith.addf %69, %71 : vector<8x24xf32>
    %cst_41 = arith.constant 0.000000e+00 : f32
    %73 = vector.broadcast %cst_41 : f32 to vector<8x24xf32>
    %74 = arith.maximumf %72, %73 : vector<8x24xf32>
    %75 = arith.truncf %74 : vector<8x24xf32> to vector<8x24xbf16>
    %c352 = arith.constant 352 : index
    %c0_42 = arith.constant 0 : index
    %76 = vector.load %arg3[%c352, %c0_42] : memref<376x128xbf16, #tpu.memory_space<vmem>>, vector<24x128xbf16>
    %cst_43 = arith.constant dense<0.000000e+00> : vector<8x128xf32>
    %77 = tpu.matmul %75, %76, %cst_43 {dimension_numbers = #tpu.dot_dimension_numbers<[1], [0], [0], [1], [0, 0, 1, 1], [], []>} : vector<8x24xbf16>, vector<24x128xbf16>, vector<8x128xf32> -> vector<8x128xf32>
    %c8 = arith.constant 8 : index
    %c0_44 = arith.constant 0 : index
    %78 = vector.load %arg4[%c8, %c0_44] : memref<16x128xf32, #tpu.memory_space<vmem>>, vector<1x128xf32>
    %79 = vector.broadcast %78 : vector<1x128xf32> to vector<8x128xf32>
    %80 = arith.addf %77, %79 : vector<8x128xf32>
    %cst_45 = arith.constant dense<0xFF800000> : vector<8xf32>
    %81 = vector.multi_reduction <maximumf>, %80, %cst_45 [1] : vector<8x128xf32> to vector<8xf32>
    %82 = vector.shape_cast %81 : vector<8xf32> to vector<8x1xf32>
    %83 = vector.broadcast %82 : vector<8x1xf32> to vector<8x128xf32>
    %84 = arith.subf %80, %83 : vector<8x128xf32>
    %85 = math.exp %84 : vector<8x128xf32>
    %cst_46 = arith.constant dense<0.000000e+00> : vector<8xf32>
    %86 = vector.multi_reduction <add>, %85, %cst_46 [1] : vector<8x128xf32> to vector<8xf32>
    %87 = vector.shape_cast %86 : vector<8xf32> to vector<8x1xf32>
    %88 = math.log %87 : vector<8x1xf32>
    %89 = vector.broadcast %88 : vector<8x1xf32> to vector<8x128xf32>
    %90 = arith.subf %84, %89 : vector<8x128xf32>
    %91 = tpu.concatenate %80, %90 in 1 : vector<8x128xf32>, vector<8x128xf32> -> vector<8x256xf32>
    %c0_47 = arith.constant 0 : index
    %c0_48 = arith.constant 0 : index
    %92 = vector.load %arg5[%c0_47, %c0_48] : memref<8x256xf32, #tpu.memory_space<vmem>>, vector<8x256xf32>
    tpu.vector_store %arg5[%c0_47, %c0_48], %91 {strides = array<i32>} : memref<8x256xf32, #tpu.memory_space<vmem>>, vector<8x256xf32>,
    return
  }
}

</mosaic_0001>

<bundles_post_ra>
// kernel: ginnet_forward.1
= control target key start
LH: loop header
LB: loop body
LE: loop exit
PB: predicated region body
PF: predicated region fallthrough
CT: control target
= control target key end

     0   :  { %vm114_vm0 = vcmask 326656   ;;  %vm139_vm1 = vcmask 1043456   ;;  %vm443_vm2 = vcmask 261120   ;;  %s2412_s27 = smov 32   ;;  %s2414_s11 = smov 64   ;;  %vm2415_vm3 = vmmov 0   ;;  %s2831_s3 = inlined_call_operand.vmem [shape: bf16[376,128], index: 3, kind: input, shape index: {}]   ;;  %s2832_s0 = inlined_call_operand.vmem [shape: bf16[128,40], index: 0, kind: input, shape index: {}]   ;;  %s2833_s1 = inlined_call_operand.vmem [shape: bf16[128,128], index: 1, kind: input, shape index: {}]   ;;  %s2834_s4 = inlined_call_operand.vmem [shape: f32[16,128], index: 4, kind: input, shape index: {}]   ;;  %s2835_s2 = inlined_call_operand.vmem [shape: bf16[8,128], index: 2, kind: input, shape index: {}]   ;;  %s2836_s5 = inlined_call_operand.vmem [shape: f32[8,256], index: 5, kind: output, shape index: {}]  }
   0x1   :  { %v2367_v0 = vld [vmem:[%s2831_s3] sm:$0xff]   ;;  %v2368_v1 = vld [vmem:[%s2831_s3 + $0x8] sm:$0xff]   ;;  %v2369_v3 = vld [vmem:[%s2831_s3 + $0x10] ss:$0 sps:$4 sm:$0xff]   ;;  %vm1527_vm4 = vcmask 523264   ;;  %vm1646_vm5 = vcmask 785408  }
   0x2   :  { %2088 = vmatprep.subr.bf16.mxu0 %v2367_v0  ;;  %v2370_v2 = vld [vmem:[%s2832_s0] sm:$0xff]   ;;  %v141_v4 = vsel %vm139_vm1, %v2369_v3, 0  ;;  %v2371_v5 = vld [vmem:[%s2832_s0 + $0x8] sm:$0xff]   ;;  %v2372_v6 = vld [vmem:[%s2832_s0 + $0x10] sm:$0xff]   ;;  %vm1725_vm6 = vcmask 457728   ;;  %vm1791_vm7 = vcmask 195584  }
   0x3   :  { %2089 = vmatpush3.bf16.msra.mxu0 %v2367_v0  ;;  %2094 = vmatprep.mubr.msk.bf16.mxu0 %vm114_vm0, %v2370_v2  ;;  %v2373_v7 = vld [vmem:[%s2832_s0 + $0x18] sm:$0xff]   ;;  %v2374_v8 = vld [vmem:[%s2832_s0 + $0x20] sm:$0xff]   ;;  %v2375_v9 = vld [vmem:[%s2832_s0 + $0x28] sm:$0xff]  }
   0x4   :  { %2090 = vmatprep.subr.bf16.mxu0 %v2368_v1  ;;  %v2376_v10 = vld [vmem:[%s2832_s0 + $0x30] sm:$0xff]   ;;  %v2377_v11 = vld [vmem:[%s2832_s0 + $0x38] sm:$0xff]   ;;  %v2492_v12 = vld [vmem:[%s2833_s1] sm:$0xff]  }
   0x5   :  { %2126 = vmatprep.mubr.bf16.mxu1 %v2492_v12  ;;  %v2386_v13 = vld [vmem:[%s2831_s3 + $0x14] sm:$0xff]   ;;  %v2387_v14 = vld [vmem:[%s2831_s3 + $0x1c] sm:$0xff]   ;;  %v2504_v39 = vld [vmem:[%s2833_s1 + $0x8] sm:$0xff]  }
   0x6   :  { %v2509_v40 = vld [vmem:[%s2833_s1 + $0x10] sm:$0xff]   ;;  %v2516_v41 = vld [vmem:[%s2833_s1 + $0x18] sm:$0xff]   ;;  %v2521_v42 = vld [vmem:[%s2833_s1 + $0x20] sm:$0xff]  }
   0x7   :  { %2091 = vmatpush3.bf16.msra.mxu0 %v2368_v1  ;;  %v2528_v43 = vld [vmem:[%s2833_s1 + $0x28] sm:$0xff]   ;;  %v2533_v44 = vld [vmem:[%s2833_s1 + $0x30] sm:$0xff]   ;;  %v2540_v45 = vld [vmem:[%s2833_s1 + $0x38] sm:$0xff]  }
   0x8   :  { %2362 = vmatprep.subr.msk.bf16.mxu0 %vm139_vm1, %v2369_v3  ;;  %v2388_v46 = vld [vmem:[%s2831_s3 + $0x24] sm:$0xff]   ;;  %v2389_v47 = vld [vmem:[%s2831_s3 + $0x2c] sm:$0xff]   ;;  %v1873_v48 = vld [vmem:[%s2834_s4] ss:$0 sm:$0xff] }
   0xb   :  { %2093 = vmatpush3.bf16.msra.mxu0 %v141_v4 }
   0xc   :  { %2142 = vmatprep.subr.bf16.mxu0 %v2386_v13 }
   0xe   :  { %2095 = vmatmul.mubr.msk.bf16.vlgmr.msra.gmra.mrb[0].mxu0 %vm114_vm0, %v2371_v5 }
   0xf   :  { %2098 = vmatprep.mubr.msk.bf16.mxu0 %vm114_vm0, %v2372_v6  ;;  %2143 = vmatpush3.bf16.msra.mxu0 %v2386_v13 }
  0x10   :  { %2144 = vmatprep.subr.bf16.mxu0 %v2387_v14 }
  0x13   :  { %2145 = vmatpush3.bf16.msra.mxu0 %v2387_v14 }
  0x16   :  { %2099 = vmatmul.mubr.msk.bf16.gmra.mrb[4].mxu0 %vm114_vm0, %v2373_v7 }
  0x17   :  { %2102 = vmatprep.mubr.msk.bf16.mxu0 %vm114_vm0, %v2374_v8 }
  0x1e   :  { %2103 = vmatmul.mubr.msk.bf16.gmra.mrb[8].mxu0 %vm114_vm0, %v2375_v9 }
  0x1f   :  { %2106 = vmatprep.mubr.msk.bf16.mxu0 %vm114_vm0, %v2376_v10 }
  0x26   :  { %2107 = vmatmul.mubr.msk.bf16.gmra.mrb[12].mxu0 %vm114_vm0, %v2377_v11 }
  0xe1   :  { %v2096_v15 = vpop.f32.mrb[0].mxu0 }
  0xe2   :  { %v177_v16 = vpop.f32.mrb[1].mxu0 }
  0xe3   :  { %v2097_v17 = vpop.f32.mrb[2].mxu0 }
  0xe4   :  { %v241_v18 = vpack.c.bf16 %v2097_v17, %v2096_v15  ;;  %v180_v19 = vpop.f32.mrb[3].mxu0 }
  0xe5   :  { %v240_v20 = vpack.c.bf16 %v180_v19, %v177_v16 }
  0xe7   :  { %2110 = vmatprep.subr.bf16.mxu1 %v240_v20 }
  0xe8   :  { %2111 = vmatpush3.bf16.msra.mxu1 %v240_v20 }
  0xe9   :  { %v2100_v21 = vpop.f32.mrb[4].mxu0  ;;  %2112 = vmatprep.subr.bf16.mxu1 %v241_v18 }
  0xea   :  { %v193_v22 = vpop.f32.mrb[5].mxu0 }
  0xeb   :  { %v2101_v23 = vpop.f32.mrb[6].mxu0 }
  0xec   :  { %v243_v24 = vpack.c.bf16 %v2101_v23, %v2100_v21  ;;  %v196_v25 = vpop.f32.mrb[7].mxu0  ;;  %2113 = vmatpush3.bf16.msra.mxu1 %v241_v18 }
  0xed   :  { %v242_v26 = vpack.c.bf16 %v196_v25, %v193_v22 }
  0xef   :  { %2114 = vmatprep.subr.bf16.mxu1 %v242_v26 }
  0xf0   :  { %2115 = vmatpush3.bf16.msra.mxu1 %v242_v26 }
  0xf1   :  { %v2104_v27 = vpop.f32.mrb[8].mxu0  ;;  %2116 = vmatprep.subr.bf16.mxu1 %v243_v24 }
  0xf2   :  { %v209_v28 = vpop.f32.mrb[9].mxu0 }
  0xf3   :  { %v2105_v29 = vpop.f32.mrb[10].mxu0 }
  0xf4   :  { %v245_v30 = vpack.c.bf16 %v2105_v29, %v2104_v27  ;;  %v212_v31 = vpop.f32.mrb[11].mxu0  ;;  %2117 = vmatpush3.bf16.msra.mxu1 %v243_v24 }
  0xf5   :  { %v244_v32 = vpack.c.bf16 %v212_v31, %v209_v28 }
  0xf7   :  { %2118 = vmatprep.subr.bf16.mxu1 %v244_v32 }
  0xf8   :  { %2119 = vmatpush3.bf16.msra.mxu1 %v244_v32 }
  0xf9   :  { %v2108_v33 = vpop.f32.mrb[12].mxu0  ;;  %2120 = vmatprep.subr.bf16.mxu1 %v245_v30 }
  0xfa   :  { %v225_v34 = vpop.f32.mrb[13].mxu0 }
  0xfb   :  { %v2109_v35 = vpop.f32.mrb[14].mxu0 }
  0xfc   :  { %v247_v36 = vpack.c.bf16 %v2109_v35, %v2108_v33  ;;  %v228_v37 = vpop.f32.mrb[15].mxu0  ;;  %2121 = vmatpush3.bf16.msra.mxu1 %v245_v30 }
  0xfd   :  { %v246_v38 = vpack.c.bf16 %v228_v37, %v225_v34 }
  0xff   :  { %2122 = vmatprep.subr.bf16.mxu1 %v246_v38 }
 0x100   :  { %2123 = vmatpush3.bf16.msra.mxu1 %v246_v38 }
 0x101   :  { %2124 = vmatprep.subr.bf16.mxu1 %v247_v36 }
 0x104   :  { %2125 = vmatpush3.bf16.msra.mxu1 %v247_v36 }
 0x105   :  { %2162 = vmatprep.subr.bf16.mxu1 %v2388_v46 }
 0x107   :  { %2127 = vmatmul.mubr.bf16.vlgmr.msra.gmra.mrb[0].mxu1 %v2504_v39 }
 0x108   :  { %2130 = vmatprep.mubr.bf16.mxu1 %v2509_v40  ;;  %2163 = vmatpush3.bf16.msra.mxu1 %v2388_v46 }
 0x109   :  { %2164 = vmatprep.subr.bf16.mxu1 %v2389_v47 }
 0x10c   :  { %2165 = vmatpush3.bf16.msra.mxu1 %v2389_v47 }
 0x10f   :  { %2131 = vmatmul.mubr.bf16.gmra.mrb[4].mxu1 %v2516_v41 }
 0x110   :  { %2134 = vmatprep.mubr.bf16.mxu1 %v2521_v42 }
 0x117   :  { %2135 = vmatmul.mubr.bf16.gmra.mrb[8].mxu1 %v2528_v43 }
 0x118   :  { %2138 = vmatprep.mubr.bf16.mxu1 %v2533_v44 }
 0x11f   :  { %2139 = vmatmul.mubr.bf16.gmra.mrb[12].mxu1 %v2540_v45 }
 0x1da   :  { %v2128_v49 = vpop.f32.mrb[0].mxu1 }
 0x1db   :  { %v344_v50 = vadd.f32 %v2128_v49, %v1873_v48  ;;  %v335_v51 = vpop.f32.mrb[1].mxu1 }
 0x1dc   :  { %v336_v52 = vadd.f32 %v1873_v48, %v335_v51  ;;  %v2129_v53 = vpop.f32.mrb[2].mxu1 }
 0x1dd   :  { %v347_v54 = vadd.f32 %v2129_v53, %v1873_v48  ;;  %v338_v55 = vpop.f32.mrb[3].mxu1  ;;  %v400_v57 = vmax.f32 %v344_v50, 0.0  ;;  %v1882_v50 = vld [vmem:[%s2834_s4 + $0x1] ss:$0 sm:$0xff] }
 0x1de   :  { %v339_v56 = vadd.f32 %v1873_v48, %v338_v55  ;;  %v398_v59 = vmax.f32 %v336_v52, 0.0 }
 0x1df   :  { %v401_v58 = vmax.f32 %v347_v54, 0.0 }
 0x1e0   :  { %v399_v60 = vmax.f32 %v339_v56, 0.0 }
 0x1e1   :  { %v415_v61 = vpack.c.bf16 %v401_v58, %v400_v57 }
 0x1e2   :  { %v414_v62 = vpack.c.bf16 %v399_v60, %v398_v59  ;;  %v2132_v63 = vpop.f32.mrb[4].mxu1 }
 0x1e3   :  { %v360_v0 = vadd.f32 %v2132_v63, %v1873_v48  ;;  %v351_v1 = vpop.f32.mrb[5].mxu1 }
 0x1e4   :  { %v352_v2 = vadd.f32 %v1873_v48, %v351_v1  ;;  %v2133_v3 = vpop.f32.mrb[6].mxu1  ;;  %2146 = vmatprep.mubr.msk.bf16.mxu0 %vm443_vm2, %v414_v62 }
 0x1e5   :  { %v363_v4 = vadd.f32 %v2133_v3, %v1873_v48  ;;  %v354_v5 = vpop.f32.mrb[7].mxu1  ;;  %2147 = vmatmul.mubr.msk.bf16.vlgmr.msra.gmra.mrb[16].mxu0 %vm443_vm2, %v415_v61  ;;  %v404_v7 = vmax.f32 %v360_v0, 0.0 }
 0x1e6   :  { %v355_v6 = vadd.f32 %v1873_v48, %v354_v5  ;;  %v402_v9 = vmax.f32 %v352_v2, 0.0 }
 0x1e7   :  { %v405_v8 = vmax.f32 %v363_v4, 0.0 }
 0x1e8   :  { %v403_v10 = vmax.f32 %v355_v6, 0.0 }
 0x1e9   :  { %v417_v11 = vpack.c.bf16 %v405_v8, %v404_v7 }
 0x1ea   :  { %v416_v13 = vpack.c.bf16 %v403_v10, %v402_v9  ;;  %v2136_v14 = vpop.f32.mrb[8].mxu1 }
 0x1eb   :  { %v376_v15 = vadd.f32 %v2136_v14, %v1873_v48  ;;  %v367_v16 = vpop.f32.mrb[9].mxu1 }
 0x1ec   :  { %v368_v17 = vadd.f32 %v1873_v48, %v367_v16  ;;  %v2137_v18 = vpop.f32.mrb[10].mxu1  ;;  %2150 = vmatprep.mubr.msk.bf16.mxu0 %vm443_vm2, %v416_v13 }
 0x1ed   :  { %v379_v19 = vadd.f32 %v2137_v18, %v1873_v48  ;;  %v370_v20 = vpop.f32.mrb[11].mxu1  ;;  %2151 = vmatmul.mubr.msk.bf16.gmra.mrb[20].mxu0 %vm443_vm2, %v417_v11  ;;  %v408_v22 = vmax.f32 %v376_v15, 0.0 }
 0x1ee   :  { %v371_v21 = vadd.f32 %v1873_v48, %v370_v20  ;;  %v406_v24 = vmax.f32 %v368_v17, 0.0 }
 0x1ef   :  { %v409_v23 = vmax.f32 %v379_v19, 0.0 }
 0x1f0   :  { %v407_v25 = vmax.f32 %v371_v21, 0.0 }
 0x1f1   :  { %v419_v26 = vpack.c.bf16 %v409_v23, %v408_v22 }
 0x1f2   :  { %v418_v27 = vpack.c.bf16 %v407_v25, %v406_v24  ;;  %v2140_v28 = vpop.f32.mrb[12].mxu1 }
 0x1f3   :  { %v392_v29 = vadd.f32 %v2140_v28, %v1873_v48  ;;  %v383_v30 = vpop.f32.mrb[13].mxu1 }
 0x1f4   :  { %v384_v31 = vadd.f32 %v1873_v48, %v383_v30  ;;  %v2141_v32 = vpop.f32.mrb[14].mxu1  ;;  %2154 = vmatprep.mubr.msk.bf16.mxu0 %vm443_vm2, %v418_v27 }
 0x1f5   :  { %v395_v33 = vadd.f32 %v2141_v32, %v1873_v48  ;;  %v386_v34 = vpop.f32.mrb[15].mxu1  ;;  %2155 = vmatmul.mubr.msk.bf16.gmra.mrb[24].mxu0 %vm443_vm2, %v419_v26  ;;  %v412_v36 = vmax.f32 %v392_v29, 0.0 }
 0x1f6   :  { %v387_v35 = vadd.f32 %v1873_v48, %v386_v34  ;;  %v410_v38 = vmax.f32 %v384_v31, 0.0 }
 0x1f7   :  { %v413_v37 = vmax.f32 %v395_v33, 0.0 }
 0x1f8   :  { %v411_v46 = vmax.f32 %v387_v35, 0.0 }
 0x1f9   :  { %v421_v47 = vpack.c.bf16 %v413_v37, %v412_v36 }
 0x1fa   :  { %v420_v49 = vpack.c.bf16 %v411_v46, %v410_v38 }
 0x1fc   :  { %2158 = vmatprep.mubr.msk.bf16.mxu0 %vm443_vm2, %v420_v49 }
 0x1fd   :  { %2159 = vmatmul.mubr.msk.bf16.gmra.mrb[28].mxu0 %vm443_vm2, %v421_v47 }
 0x1fe   :  { %2198 = vmatprep.mubr.bf16.mxu0 %v2492_v12 }
 0x2b8   :  { %v2148_v51 = vpop.f32.mrb[16].mxu0 }
 0x2b9   :  { %v511_v52 = vadd.f32 %v2148_v51, %v1882_v50  ;;  %v502_v53 = vpop.f32.mrb[17].mxu0 }
 0x2ba   :  { %v503_v48 = vadd.f32 %v1882_v50, %v502_v53  ;;  %v2149_v54 = vpop.f32.mrb[18].mxu0 }
 0x2bb   :  { %v514_v55 = vadd.f32 %v2149_v54, %v1882_v50  ;;  %v505_v56 = vpop.f32.mrb[19].mxu0  ;;  %v567_v58 = vmax.f32 %v511_v52, 0.0  ;;  %v2390_v52 = vld [vmem:[%s2831_s3 + $0x34] sm:$0xff]  }
 0x2bc   :  { %v506_v57 = vadd.f32 %v1882_v50, %v505_v56  ;;  %v565_v60 = vmax.f32 %v503_v48, 0.0  ;;  %2214 = vmatprep.subr.bf16.mxu1 %v2390_v52 }
 0x2bd   :  { %v568_v59 = vmax.f32 %v514_v55, 0.0 }
 0x2be   :  { %v566_v61 = vmax.f32 %v506_v57, 0.0 }
 0x2bf   :  { %v2564_v62 = vpack.c.bf16 %v568_v59, %v567_v58 }
 0x2c0   :  { %v2566_v63 = vpack.c.bf16 %v566_v61, %v565_v60  ;;  %v2152_v0 = vpop.f32.mrb[20].mxu0 }
 0x2c1   :  { %v527_v1 = vadd.f32 %v2152_v0, %v1882_v50  ;;  %v518_v2 = vpop.f32.mrb[21].mxu0 }
 0x2c2   :  { %v519_v3 = vadd.f32 %v1882_v50, %v518_v2  ;;  %v2153_v4 = vpop.f32.mrb[22].mxu0  ;;  %2166 = vmatprep.mubr.msk.bf16.mxu1 %vm443_vm2, %v2566_v63 }
 0x2c3   :  { %v530_v5 = vadd.f32 %v2153_v4, %v1882_v50  ;;  %v521_v6 = vpop.f32.mrb[23].mxu0  ;;  %2167 = vmatmul.mubr.msk.bf16.vlgmr.msra.gmra.mrb[16].mxu1 %vm443_vm2, %v2564_v62  ;;  %v571_v8 = vmax.f32 %v527_v1, 0.0 }
 0x2c4   :  { %v522_v7 = vadd.f32 %v1882_v50, %v521_v6  ;;  %v569_v10 = vmax.f32 %v519_v3, 0.0  ;;  %2215 = vmatpush3.bf16.msra.mxu1 %v2390_v52 }
 0x2c5   :  { %v572_v9 = vmax.f32 %v530_v5, 0.0 }
 0x2c6   :  { %v570_v11 = vmax.f32 %v522_v7, 0.0 }
 0x2c7   :  { %v2572_v13 = vpack.c.bf16 %v572_v9, %v571_v8 }
 0x2c8   :  { %v2574_v14 = vpack.c.bf16 %v570_v11, %v569_v10  ;;  %v2156_v15 = vpop.f32.mrb[24].mxu0 }
 0x2c9   :  { %v543_v16 = vadd.f32 %v2156_v15, %v1882_v50  ;;  %v534_v17 = vpop.f32.mrb[25].mxu0 }
 0x2ca   :  { %v535_v18 = vadd.f32 %v1882_v50, %v534_v17  ;;  %v2157_v19 = vpop.f32.mrb[26].mxu0  ;;  %2170 = vmatprep.mubr.msk.bf16.mxu1 %vm443_vm2, %v2574_v14  ;;  %v2392_v17 = vld [vmem:[%s2831_s3 + $0x44] sm:$0xff]  }
 0x2cb   :  { %v546_v20 = vadd.f32 %v2157_v19, %v1882_v50  ;;  %v537_v21 = vpop.f32.mrb[27].mxu0  ;;  %2171 = vmatmul.mubr.msk.bf16.gmra.mrb[20].mxu1 %vm443_vm2, %v2572_v13  ;;  %v575_v23 = vmax.f32 %v543_v16, 0.0  ;;  %v1903_v19 = vld [vmem:[%s2834_s4 + $0x2] ss:$0 sm:$0xff] }
 0x2cc   :  { %v538_v22 = vadd.f32 %v1882_v50, %v537_v21  ;;  %v573_v25 = vmax.f32 %v535_v18, 0.0  ;;  %v2393_v18 = vld [vmem:[%s2831_s3 + $0x4c] sm:$0xff]  }
 0x2cd   :  { %v576_v24 = vmax.f32 %v546_v20, 0.0 }
 0x2ce   :  { %v574_v26 = vmax.f32 %v538_v22, 0.0 }
 0x2cf   :  { %v2580_v27 = vpack.c.bf16 %v576_v24, %v575_v23 }
 0x2d0   :  { %v2582_v28 = vpack.c.bf16 %v574_v26, %v573_v25  ;;  %v2160_v29 = vpop.f32.mrb[28].mxu0 }
 0x2d1   :  { %v559_v30 = vadd.f32 %v2160_v29, %v1882_v50  ;;  %v550_v31 = vpop.f32.mrb[29].mxu0 }
 0x2d2   :  { %v551_v32 = vadd.f32 %v1882_v50, %v550_v31  ;;  %v2161_v33 = vpop.f32.mrb[30].mxu0  ;;  %2174 = vmatprep.mubr.msk.bf16.mxu1 %vm443_vm2, %v2582_v28 }
 0x2d3   :  { %v562_v34 = vadd.f32 %v2161_v33, %v1882_v50  ;;  %v553_v35 = vpop.f32.mrb[31].mxu0  ;;  %2175 = vmatmul.mubr.msk.bf16.gmra.mrb[24].mxu1 %vm443_vm2, %v2580_v27  ;;  %v579_v37 = vmax.f32 %v559_v30, 0.0 }
 0x2d4   :  { %v554_v36 = vadd.f32 %v1882_v50, %v553_v35  ;;  %v577_v46 = vmax.f32 %v551_v32, 0.0  ;;  %v2391_v50 = vld [vmem:[%s2831_s3 + $0x3c] sm:$0xff]  }
 0x2d5   :  { %v580_v38 = vmax.f32 %v562_v34, 0.0  ;;  %2216 = vmatprep.subr.bf16.mxu1 %v2391_v50 }
 0x2d6   :  { %v578_v47 = vmax.f32 %v554_v36, 0.0  ;;  %2217 = vmatpush3.bf16.msra.mxu1 %v2391_v50 }
 0x2d7   :  { %v2588_v49 = vpack.c.bf16 %v580_v38, %v579_v37 }
 0x2d8   :  { %v2590_v51 = vpack.c.bf16 %v578_v47, %v577_v46 }
 0x2da   :  { %2178 = vmatprep.mubr.msk.bf16.mxu1 %vm443_vm2, %v2590_v51 }
 0x2db   :  { %2179 = vmatmul.mubr.msk.bf16.gmra.mrb[28].mxu1 %vm443_vm2, %v2588_v49 }
 0x396   :  { %v2168_v53 = vpop.f32.mrb[16].mxu1 }
 0x397   :  { %v663_v48 = vpop.f32.mrb[17].mxu1 }
 0x398   :  { %v2169_v54 = vpop.f32.mrb[18].mxu1 }
 0x399   :  { %v727_v55 = vpack.c.bf16 %v2169_v54, %v2168_v53  ;;  %v666_v56 = vpop.f32.mrb[19].mxu1 }
 0x39a   :  { %v726_v57 = vpack.c.bf16 %v666_v56, %v663_v48 }
 0x39c   :  { %2182 = vmatprep.subr.bf16.mxu0 %v726_v57 }
 0x39d   :  { %2183 = vmatpush3.bf16.msra.mxu0 %v726_v57 }
 0x39e   :  { %v2172_v58 = vpop.f32.mrb[20].mxu1  ;;  %2184 = vmatprep.subr.bf16.mxu0 %v727_v55 }
 0x39f   :  { %v679_v59 = vpop.f32.mrb[21].mxu1 }
 0x3a0   :  { %v2173_v60 = vpop.f32.mrb[22].mxu1 }
 0x3a1   :  { %v729_v61 = vpack.c.bf16 %v2173_v60, %v2172_v58  ;;  %v682_v0 = vpop.f32.mrb[23].mxu1  ;;  %2185 = vmatpush3.bf16.msra.mxu0 %v727_v55 }
 0x3a2   :  { %v728_v1 = vpack.c.bf16 %v682_v0, %v679_v59 }
 0x3a4   :  { %2186 = vmatprep.subr.bf16.mxu0 %v728_v1 }
 0x3a5   :  { %2187 = vmatpush3.bf16.msra.mxu0 %v728_v1 }
 0x3a6   :  { %v2176_v2 = vpop.f32.mrb[24].mxu1  ;;  %2188 = vmatprep.subr.bf16.mxu0 %v729_v61 }
 0x3a7   :  { %v695_v3 = vpop.f32.mrb[25].mxu1 }
 0x3a8   :  { %v2177_v4 = vpop.f32.mrb[26].mxu1 }
 0x3a9   :  { %v731_v5 = vpack.c.bf16 %v2177_v4, %v2176_v2  ;;  %v698_v6 = vpop.f32.mrb[27].mxu1  ;;  %2189 = vmatpush3.bf16.msra.mxu0 %v729_v61 }
 0x3aa   :  { %v730_v7 = vpack.c.bf16 %v698_v6, %v695_v3 }
 0x3ac   :  { %2190 = vmatprep.subr.bf16.mxu0 %v730_v7 }
 0x3ad   :  { %2191 = vmatpush3.bf16.msra.mxu0 %v730_v7 }
 0x3ae   :  { %v2180_v8 = vpop.f32.mrb[28].mxu1  ;;  %2192 = vmatprep.subr.bf16.mxu0 %v731_v5 }
 0x3af   :  { %v711_v9 = vpop.f32.mrb[29].mxu1 }
 0x3b0   :  { %v2181_v10 = vpop.f32.mrb[30].mxu1 }
 0x3b1   :  { %v733_v11 = vpack.c.bf16 %v2181_v10, %v2180_v8  ;;  %v714_v15 = vpop.f32.mrb[31].mxu1  ;;  %2193 = vmatpush3.bf16.msra.mxu0 %v731_v5 }
 0x3b2   :  { %v732_v16 = vpack.c.bf16 %v714_v15, %v711_v9 }
 0x3b4   :  { %2194 = vmatprep.subr.bf16.mxu0 %v732_v16 }
 0x3b5   :  { %2195 = vmatpush3.bf16.msra.mxu0 %v732_v16 }
 0x3b6   :  { %2196 = vmatprep.subr.bf16.mxu0 %v733_v11 }
 0x3b9   :  { %2197 = vmatpush3.bf16.msra.mxu0 %v733_v11 }
 0x3ba   :  { %2234 = vmatprep.subr.bf16.mxu0 %v2392_v17 }
 0x3bc   :  { %2199 = vmatmul.mubr.bf16.vlgmr.msra.gmra.mrb[32].mxu0 %v2504_v39 }
 0x3bd   :  { %2202 = vmatprep.mubr.bf16.mxu0 %v2509_v40  ;;  %2235 = vmatpush3.bf16.msra.mxu0 %v2392_v17 }
 0x3be   :  { %2236 = vmatprep.subr.bf16.mxu0 %v2393_v18 }
 0x3c1   :  { %2237 = vmatpush3.bf16.msra.mxu0 %v2393_v18 }
 0x3c4   :  { %2203 = vmatmul.mubr.bf16.gmra.mrb[36].mxu0 %v2516_v41 }
 0x3c5   :  { %2206 = vmatprep.mubr.bf16.mxu0 %v2521_v42 }
 0x3cc   :  { %2207 = vmatmul.mubr.bf16.gmra.mrb[40].mxu0 %v2528_v43 }
 0x3cd   :  { %2210 = vmatprep.mubr.bf16.mxu0 %v2533_v44 }
 0x3d4   :  { %2211 = vmatmul.mubr.bf16.gmra.mrb[44].mxu0 %v2540_v45 }
 0x48f   :  { %v2200_v20 = vpop.f32.mrb[32].mxu0 }
 0x490   :  { %v782_v21 = vadd.f32 %v2200_v20, %v1903_v19  ;;  %v773_v22 = vpop.f32.mrb[33].mxu0 }
 0x491   :  { %v774_v23 = vadd.f32 %v1903_v19, %v773_v22  ;;  %v2201_v24 = vpop.f32.mrb[34].mxu0 }
 0x492   :  { %v785_v25 = vadd.f32 %v2201_v24, %v1903_v19  ;;  %v776_v26 = vpop.f32.mrb[35].mxu0  ;;  %v838_v30 = vmax.f32 %v782_v21, 0.0 }
 0x493   :  { %v777_v29 = vadd.f32 %v1903_v19, %v776_v26  ;;  %v836_v32 = vmax.f32 %v774_v23, 0.0 }
 0x494   :  { %v839_v31 = vmax.f32 %v785_v25, 0.0 }
 0x495   :  { %v837_v33 = vmax.f32 %v777_v29, 0.0 }
 0x496   :  { %v853_v34 = vpack.c.bf16 %v839_v31, %v838_v30  ;;  %v1904_v31 = vld [vmem:[%s2834_s4 + $0x3] ss:$0 sm:$0xff] }
 0x497   :  { %v852_v35 = vpack.c.bf16 %v837_v33, %v836_v32  ;;  %v2204_v36 = vpop.f32.mrb[36].mxu0 }
 0x498   :  { %v798_v37 = vadd.f32 %v2204_v36, %v1903_v19  ;;  %v789_v38 = vpop.f32.mrb[37].mxu0 }
 0x499   :  { %v790_v46 = vadd.f32 %v1903_v19, %v789_v38  ;;  %v2205_v47 = vpop.f32.mrb[38].mxu0  ;;  %2218 = vmatprep.mubr.msk.bf16.mxu1 %vm443_vm2, %v852_v35 }
 0x49a   :  { %v801_v52 = vadd.f32 %v2205_v47, %v1903_v19  ;;  %v792_v50 = vpop.f32.mrb[39].mxu0  ;;  %2219 = vmatmul.mubr.msk.bf16.vlgmr.msra.gmra.mrb[32].mxu1 %vm443_vm2, %v853_v34  ;;  %v842_v48 = vmax.f32 %v798_v37, 0.0 }
 0x49b   :  { %v793_v53 = vadd.f32 %v1903_v19, %v792_v50  ;;  %v840_v55 = vmax.f32 %v790_v46, 0.0 }
 0x49c   :  { %v843_v54 = vmax.f32 %v801_v52, 0.0 }
 0x49d   :  { %v841_v56 = vmax.f32 %v793_v53, 0.0 }
 0x49e   :  { %v855_v57 = vpack.c.bf16 %v843_v54, %v842_v48 }
 0x49f   :  { %v854_v58 = vpack.c.bf16 %v841_v56, %v840_v55  ;;  %v2208_v59 = vpop.f32.mrb[40].mxu0 }
 0x4a0   :  { %v814_v60 = vadd.f32 %v2208_v59, %v1903_v19  ;;  %v805_v61 = vpop.f32.mrb[41].mxu0 }
 0x4a1   :  { %v806_v0 = vadd.f32 %v1903_v19, %v805_v61  ;;  %v2209_v1 = vpop.f32.mrb[42].mxu0  ;;  %2222 = vmatprep.mubr.msk.bf16.mxu1 %vm443_vm2, %v854_v58 }
 0x4a2   :  { %v817_v2 = vadd.f32 %v2209_v1, %v1903_v19  ;;  %v808_v3 = vpop.f32.mrb[43].mxu0  ;;  %2223 = vmatmul.mubr.msk.bf16.gmra.mrb[36].mxu1 %vm443_vm2, %v855_v57  ;;  %v846_v5 = vmax.f32 %v814_v60, 0.0 }
 0x4a3   :  { %v809_v4 = vadd.f32 %v1903_v19, %v808_v3  ;;  %v844_v7 = vmax.f32 %v806_v0, 0.0 }
 0x4a4   :  { %v847_v6 = vmax.f32 %v817_v2, 0.0 }
 0x4a5   :  { %v845_v8 = vmax.f32 %v809_v4, 0.0 }
 0x4a6   :  { %v857_v9 = vpack.c.bf16 %v847_v6, %v846_v5 }
 0x4a7   :  { %v856_v10 = vpack.c.bf16 %v845_v8, %v844_v7  ;;  %v2212_v11 = vpop.f32.mrb[44].mxu0 }
 0x4a8   :  { %v830_v15 = vadd.f32 %v2212_v11, %v1903_v19  ;;  %v821_v16 = vpop.f32.mrb[45].mxu0 }
 0x4a9   :  { %v822_v17 = vadd.f32 %v1903_v19, %v821_v16  ;;  %v2213_v18 = vpop.f32.mrb[46].mxu0  ;;  %2226 = vmatprep.mubr.msk.bf16.mxu1 %vm443_vm2, %v856_v10 }
 0x4aa   :  { %v833_v20 = vadd.f32 %v2213_v18, %v1903_v19  ;;  %v824_v21 = vpop.f32.mrb[47].mxu0  ;;  %2227 = vmatmul.mubr.msk.bf16.gmra.mrb[40].mxu1 %vm443_vm2, %v857_v9  ;;  %v850_v23 = vmax.f32 %v830_v15, 0.0 }
 0x4ab   :  { %v825_v22 = vadd.f32 %v1903_v19, %v824_v21  ;;  %v848_v25 = vmax.f32 %v822_v17, 0.0 }
 0x4ac   :  { %v851_v24 = vmax.f32 %v833_v20, 0.0 }
 0x4ad   :  { %v849_v26 = vmax.f32 %v825_v22, 0.0 }
 0x4ae   :  { %v859_v29 = vpack.c.bf16 %v851_v24, %v850_v23 }
 0x4af   :  { %v858_v30 = vpack.c.bf16 %v849_v26, %v848_v25 }
 0x4b1   :  { %2230 = vmatprep.mubr.msk.bf16.mxu1 %vm443_vm2, %v858_v30 }
 0x4b2   :  { %2231 = vmatmul.mubr.msk.bf16.gmra.mrb[44].mxu1 %vm443_vm2, %v859_v29 }
 0x4b3   :  { %2270 = vmatprep.mubr.bf16.mxu1 %v2492_v12 }
 0x56d   :  { %v2220_v32 = vpop.f32.mrb[32].mxu1 }
 0x56e   :  { %v948_v33 = vadd.f32 %v2220_v32, %v1904_v31  ;;  %v939_v34 = vpop.f32.mrb[33].mxu1 }
 0x56f   :  { %v940_v19 = vadd.f32 %v1904_v31, %v939_v34  ;;  %v2221_v35 = vpop.f32.mrb[34].mxu1 }
 0x570   :  { %v951_v36 = vadd.f32 %v2221_v35, %v1904_v31  ;;  %v942_v37 = vpop.f32.mrb[35].mxu1  ;;  %v1004_v46 = vmax.f32 %v948_v33, 0.0 }
 0x571   :  { %v943_v38 = vadd.f32 %v1904_v31, %v942_v37  ;;  %v1002_v52 = vmax.f32 %v940_v19, 0.0 }
 0x572   :  { %v1005_v47 = vmax.f32 %v951_v36, 0.0 }
 0x573   :  { %v1003_v50 = vmax.f32 %v943_v38, 0.0 }
 0x574   :  { %v1019_v53 = vpack.c.bf16 %v1005_v47, %v1004_v46  ;;  %v2394_v46 = vld [vmem:[%s2831_s3 + $0x54] sm:$0xff]  }
 0x575   :  { %v2224_v48 = vpop.f32.mrb[36].mxu1  ;;  %v1018_v54 = vpack.c.bf16 %v1003_v50, %v1002_v52  ;;  %2286 = vmatprep.subr.bf16.mxu0 %v2394_v46 }
 0x576   :  { %v964_v12 = vadd.f32 %v2224_v48, %v1904_v31  ;;  %1473 = vrot.lane.b32.xlu1 %v1019_v53, %s2412_s27  ;;  %v955_v55 = vpop.f32.mrb[37].mxu1 }
 0x577   :  { %v956_v56 = vadd.f32 %v1904_v31, %v955_v55  ;;  %v2225_v57 = vpop.f32.mrb[38].mxu1  ;;  %1471 = vrot.lane.b32.xlu0 %v1018_v54, %s2412_s27  ;;  %2238 = vmatprep.mubr.msk.bf16.mxu0 %vm443_vm2, %v1018_v54 }
 0x578   :  { %v967_v58 = vadd.f32 %v2225_v57, %v1904_v31  ;;  %v958_v59 = vpop.f32.mrb[39].mxu1  ;;  %2239 = vmatmul.mubr.msk.bf16.vlgmr.msra.gmra.mrb[48].mxu0 %vm443_vm2, %v1019_v53  ;;  %v1008_v61 = vmax.f32 %v964_v12, 0.0 }
 0x579   :  { %v959_v60 = vadd.f32 %v1904_v31, %v958_v59  ;;  %v1006_v1 = vmax.f32 %v956_v56, 0.0  ;;  %2287 = vmatpush3.bf16.msra.mxu0 %v2394_v46 }
 0x57a   :  { %v1009_v0 = vmax.f32 %v967_v58, 0.0 }
 0x57b   :  { %v1007_v2 = vmax.f32 %v959_v60, 0.0 }
 0x57c   :  { %v2634_v3 = vpack.c.bf16 %v1009_v0, %v1008_v61 }
 0x57d   :  { %v2636_v4 = vpack.c.bf16 %v1007_v2, %v1006_v1  ;;  %v2228_v5 = vpop.f32.mrb[40].mxu1 }
 0x57e   :  { %v980_v6 = vadd.f32 %v2228_v5, %v1904_v31  ;;  %v971_v7 = vpop.f32.mrb[41].mxu1 }
 0x57f   :  { %v972_v8 = vadd.f32 %v1904_v31, %v971_v7  ;;  %v2229_v9 = vpop.f32.mrb[42].mxu1  ;;  %2242 = vmatprep.mubr.msk.bf16.mxu0 %vm443_vm2, %v2636_v4 }
 0x580   :  { %v983_v10 = vadd.f32 %v2229_v9, %v1904_v31  ;;  %v974_v11 = vpop.f32.mrb[43].mxu1  ;;  %2243 = vmatmul.mubr.msk.bf16.gmra.mrb[52].mxu0 %vm443_vm2, %v2634_v3  ;;  %v1012_v16 = vmax.f32 %v980_v6, 0.0 }
 0x581   :  { %v975_v15 = vadd.f32 %v1904_v31, %v974_v11  ;;  %v1010_v18 = vmax.f32 %v972_v8, 0.0 }
 0x582   :  { %v1013_v17 = vmax.f32 %v983_v10, 0.0 }
 0x583   :  { %v1011_v20 = vmax.f32 %v975_v15, 0.0  ;;  %v1925_v15 = vld [vmem:[%s2834_s4 + $0x4] ss:$0 sm:$0xff] }
 0x584   :  { %v2642_v21 = vpack.c.bf16 %v1013_v17, %v1012_v16 }
 0x585   :  { %v2644_v22 = vpack.c.bf16 %v1011_v20, %v1010_v18  ;;  %v2232_v23 = vpop.f32.mrb[44].mxu1 }
 0x586   :  { %v996_v24 = vadd.f32 %v2232_v23, %v1904_v31  ;;  %v987_v25 = vpop.f32.mrb[45].mxu1 }
 0x587   :  { %v988_v26 = vadd.f32 %v1904_v31, %v987_v25  ;;  %v2233_v29 = vpop.f32.mrb[46].mxu1  ;;  %2246 = vmatprep.mubr.msk.bf16.mxu0 %vm443_vm2, %v2644_v22 }
 0x588   :  { %v999_v30 = vadd.f32 %v2233_v29, %v1904_v31  ;;  %v990_v32 = vpop.f32.mrb[47].mxu1  ;;  %2247 = vmatmul.mubr.msk.bf16.gmra.mrb[56].mxu0 %vm443_vm2, %v2642_v21  ;;  %v1016_v34 = vmax.f32 %v996_v24, 0.0 }
 0x589   :  { %v991_v33 = vadd.f32 %v1904_v31, %v990_v32  ;;  %v1014_v35 = vmax.f32 %v988_v26, 0.0  ;;  %v2395_v31 = vld [vmem:[%s2831_s3 + $0x5c] sm:$0xff]  }
 0x58a   :  { %v1017_v19 = vmax.f32 %v999_v30, 0.0  ;;  %2288 = vmatprep.subr.bf16.mxu0 %v2395_v31 }
 0x58b   :  { %v1015_v36 = vmax.f32 %v991_v33, 0.0  ;;  %2289 = vmatpush3.bf16.msra.mxu0 %v2395_v31 }
 0x58c   :  { %v2650_v37 = vpack.c.bf16 %v1017_v19, %v1016_v34 }
 0x58d   :  { %v2652_v38 = vpack.c.bf16 %v1015_v36, %v1014_v35 }
 0x58f   :  { %2250 = vmatprep.mubr.msk.bf16.mxu0 %vm443_vm2, %v2652_v38 }
 0x590   :  { %2251 = vmatmul.mubr.msk.bf16.gmra.mrb[60].mxu0 %vm443_vm2, %v2650_v37 }
 0x64b   :  { %v2240_v47 = vpop.f32.mrb[48].mxu0 }
 0x64c   :  { %v1100_v52 = vpop.f32.mrb[49].mxu0 }
 0x64d   :  { %v2241_v50 = vpop.f32.mrb[50].mxu0 }
 0x64e   :  { %v1164_v53 = vpack.c.bf16 %v2241_v50, %v2240_v47  ;;  %v1103_v48 = vpop.f32.mrb[51].mxu0 }
 0x64f   :  { %v1163_v54 = vpack.c.bf16 %v1103_v48, %v1100_v52 }
 0x651   :  { %2254 = vmatprep.subr.bf16.mxu1 %v1163_v54 }
 0x652   :  { %2255 = vmatpush3.bf16.msra.mxu1 %v1163_v54 }
 0x653   :  { %v2244_v12 = vpop.f32.mrb[52].mxu0  ;;  %2256 = vmatprep.subr.bf16.mxu1 %v1164_v53 }
 0x654   :  { %v1116_v55 = vpop.f32.mrb[53].mxu0 }
 0x655   :  { %v2245_v56 = vpop.f32.mrb[54].mxu0 }
 0x656   :  { %v1166_v57 = vpack.c.bf16 %v2245_v56, %v2244_v12  ;;  %v1119_v58 = vpop.f32.mrb[55].mxu0  ;;  %2257 = vmatpush3.bf16.msra.mxu1 %v1164_v53 }
 0x657   :  { %v1165_v59 = vpack.c.bf16 %v1119_v58, %v1116_v55 }
 0x659   :  { %2258 = vmatprep.subr.bf16.mxu1 %v1165_v59 }
 0x65a   :  { %2259 = vmatpush3.bf16.msra.mxu1 %v1165_v59 }
 0x65b   :  { %v2248_v60 = vpop.f32.mrb[56].mxu0  ;;  %2260 = vmatprep.subr.bf16.mxu1 %v1166_v57 }
 0x65c   :  { %v1132_v61 = vpop.f32.mrb[57].mxu0 }
 0x65d   :  { %v2249_v0 = vpop.f32.mrb[58].mxu0 }
 0x65e   :  { %v1168_v1 = vpack.c.bf16 %v2249_v0, %v2248_v60  ;;  %v1135_v2 = vpop.f32.mrb[59].mxu0  ;;  %2261 = vmatpush3.bf16.msra.mxu1 %v1166_v57 }
 0x65f   :  { %v1167_v5 = vpack.c.bf16 %v1135_v2, %v1132_v61 }
 0x661   :  { %2262 = vmatprep.subr.bf16.mxu1 %v1167_v5 }
 0x662   :  { %2263 = vmatpush3.bf16.msra.mxu1 %v1167_v5 }
 0x663   :  { %v2252_v6 = vpop.f32.mrb[60].mxu0  ;;  %2264 = vmatprep.subr.bf16.mxu1 %v1168_v1 }
 0x664   :  { %v1148_v7 = vpop.f32.mrb[61].mxu0 }
 0x665   :  { %v2253_v8 = vpop.f32.mrb[62].mxu0 }
 0x666   :  { %v1170_v9 = vpack.c.bf16 %v2253_v8, %v2252_v6  ;;  %v1151_v10 = vpop.f32.mrb[63].mxu0  ;;  %2265 = vmatpush3.bf16.msra.mxu1 %v1168_v1 }
 0x667   :  { %v1169_v11 = vpack.c.bf16 %v1151_v10, %v1148_v7 }
 0x669   :  { %2266 = vmatprep.subr.bf16.mxu1 %v1169_v11 }
 0x66a   :  { %2267 = vmatpush3.bf16.msra.mxu1 %v1169_v11 }
 0x66b   :  { %2268 = vmatprep.subr.bf16.mxu1 %v1170_v9 }
 0x66e   :  { %2269 = vmatpush3.bf16.msra.mxu1 %v1170_v9 }
 0x671   :  { %2271 = vmatmul.mubr.bf16.vlgmr.msra.gmra.mrb[48].mxu1 %v2504_v39 }
 0x672   :  { %2274 = vmatprep.mubr.bf16.mxu1 %v2509_v40 }
 0x679   :  { %2275 = vmatmul.mubr.bf16.gmra.mrb[52].mxu1 %v2516_v41 }
 0x67a   :  { %2278 = vmatprep.mubr.bf16.mxu1 %v2521_v42 }
 0x681   :  { %2279 = vmatmul.mubr.bf16.gmra.mrb[56].mxu1 %v2528_v43 }
 0x682   :  { %2282 = vmatprep.mubr.bf16.mxu1 %v2533_v44 }
 0x689   :  { %2283 = vmatmul.mubr.bf16.gmra.mrb[60].mxu1 %v2540_v45 }
 0x744   :  { %v2272_v16 = vpop.f32.mrb[48].mxu1 }
 0x745   :  { %v1219_v17 = vadd.f32 %v2272_v16, %v1925_v15  ;;  %v1210_v18 = vpop.f32.mrb[49].mxu1 }
 0x746   :  { %v1211_v39 = vadd.f32 %v1925_v15, %v1210_v18  ;;  %v2273_v20 = vpop.f32.mrb[50].mxu1 }
 0x747   :  { %v1222_v40 = vadd.f32 %v2273_v20, %v1925_v15  ;;  %v1213_v23 = vpop.f32.mrb[51].mxu1  ;;  %v1275_v24 = vmax.f32 %v1219_v17, 0.0 }
 0x748   :  { %v1214_v41 = vadd.f32 %v1925_v15, %v1213_v23  ;;  %v1273_v25 = vmax.f32 %v1211_v39, 0.0 }
 0x749   :  { %v1276_v42 = vmax.f32 %v1222_v40, 0.0 }
 0x74a   :  { %v1274_v43 = vmax.f32 %v1214_v41, 0.0  ;;  %v2413_v41 = vmov 0.0  }
 0x74b   :  { %v1290_v26 = vpack.c.bf16 %v1276_v42, %v1275_v24  ;;  %2306 = vmatprep.subr.bf16.mxu1 %v2413_v41  ;;  %2326 = vmatprep.subr.bf16.mxu0 %v2413_v41  ;;  %v2687_v24 = vld [vmem:[%s2834_s4 + $0x5] ss:$0 sm:$0xff] }
 0x74c   :  { %v1289_v44 = vpack.c.bf16 %v1274_v43, %v1273_v25  ;;  %v2276_v29 = vpop.f32.mrb[52].mxu1  ;;  %2322 = vmatprep.mubr.msk.bf16.mxu1 %vm2415_vm3, %v2413_v41 }
 0x74d   :  { %v1235_v45 = vadd.f32 %v2276_v29, %v1925_v15  ;;  %v1226_v30 = vpop.f32.mrb[53].mxu1 }
 0x74e   :  { %v1227_v32 = vadd.f32 %v1925_v15, %v1226_v30  ;;  %v2277_v33 = vpop.f32.mrb[54].mxu1  ;;  %2290 = vmatprep.mubr.msk.bf16.mxu0 %vm443_vm2, %v1289_v44 }
 0x74f   :  { %v1238_v34 = vadd.f32 %v2277_v33, %v1925_v15  ;;  %v1229_v19 = vpop.f32.mrb[55].mxu1  ;;  %2291 = vmatmul.mubr.msk.bf16.vlgmr.msra.gmra.mrb[64].mxu0 %vm443_vm2, %v1290_v26  ;;  %v1279_v36 = vmax.f32 %v1235_v45, 0.0 }
 0x750   :  { %v1230_v35 = vadd.f32 %v1925_v15, %v1229_v19  ;;  %v1277_v31 = vmax.f32 %v1227_v32, 0.0 }
 0x751   :  { %v1280_v46 = vmax.f32 %v1238_v34, 0.0 }
 0x752   :  { %v1278_v47 = vmax.f32 %v1230_v35, 0.0 }
 0x753   :  { %v1292_v52 = vpack.c.bf16 %v1280_v46, %v1279_v36 }
 0x754   :  { %v1291_v50 = vpack.c.bf16 %v1278_v47, %v1277_v31  ;;  %v2280_v53 = vpop.f32.mrb[56].mxu1 }
 0x755   :  { %v1251_v48 = vadd.f32 %v2280_v53, %v1925_v15  ;;  %v1242_v54 = vpop.f32.mrb[57].mxu1 }
 0x756   :  { %v1243_v12 = vadd.f32 %v1925_v15, %v1242_v54  ;;  %v2281_v55 = vpop.f32.mrb[58].mxu1  ;;  %2294 = vmatprep.mubr.msk.bf16.mxu0 %vm443_vm2, %v1291_v50 }
 0x757   :  { %v1254_v56 = vadd.f32 %v2281_v55, %v1925_v15  ;;  %v1245_v57 = vpop.f32.mrb[59].mxu1  ;;  %2295 = vmatmul.mubr.msk.bf16.gmra.mrb[68].mxu0 %vm443_vm2, %v1292_v52  ;;  %v1283_v59 = vmax.f32 %v1251_v48, 0.0 }
 0x758   :  { %v1246_v58 = vadd.f32 %v1925_v15, %v1245_v57  ;;  %v1281_v61 = vmax.f32 %v1243_v12, 0.0 }
 0x759   :  { %v1284_v60 = vmax.f32 %v1254_v56, 0.0 }
 0x75a   :  { %v1282_v0 = vmax.f32 %v1246_v58, 0.0 }
 0x75b   :  { %v1294_v1 = vpack.c.bf16 %v1284_v60, %v1283_v59 }
 0x75c   :  { %v1293_v2 = vpack.c.bf16 %v1282_v0, %v1281_v61  ;;  %v2284_v5 = vpop.f32.mrb[60].mxu1 }
 0x75d   :  { %v1267_v6 = vadd.f32 %v2284_v5, %v1925_v15  ;;  %v1258_v7 = vpop.f32.mrb[61].mxu1 }
 0x75e   :  { %v1259_v8 = vadd.f32 %v1925_v15, %v1258_v7  ;;  %v2285_v9 = vpop.f32.mrb[62].mxu1  ;;  %2298 = vmatprep.mubr.msk.bf16.mxu0 %vm443_vm2, %v1293_v2 }
 0x75f   :  { %v1270_v10 = vadd.f32 %v2285_v9, %v1925_v15  ;;  %v1261_v11 = vpop.f32.mrb[63].mxu1  ;;  %2299 = vmatmul.mubr.msk.bf16.gmra.mrb[72].mxu0 %vm443_vm2, %v1294_v1  ;;  %v1287_v17 = vmax.f32 %v1267_v6, 0.0 }
 0x760   :  { %v1262_v16 = vadd.f32 %v1925_v15, %v1261_v11  ;;  %v1285_v39 = vmax.f32 %v1259_v8, 0.0 }
 0x761   :  { %v1288_v18 = vmax.f32 %v1270_v10, 0.0 }
 0x762   :  { %v1286_v20 = vmax.f32 %v1262_v16, 0.0 }
 0x763   :  { %v1296_v40 = vpack.c.bf16 %v1288_v18, %v1287_v17 }
 0x764   :  { %v1295_v23 = vpack.c.bf16 %v1286_v20, %v1285_v39 }
 0x766   :  { %2302 = vmatprep.mubr.msk.bf16.mxu0 %vm443_vm2, %v1295_v23 }
 0x767   :  { %2303 = vmatmul.mubr.msk.bf16.gmra.mrb[76].mxu0 %vm443_vm2, %v1296_v40 }
 0x768   :  { %2338 = vmatprep.mubr.msk.bf16.mxu0 %vm2415_vm3, %v2413_v41 }
 0x822   :  { %v2292_v15 = vpop.f32.mrb[64].mxu0 }
 0x823   :  { %v1385_v42 = vadd.f32 %v2292_v15, %v2687_v24  ;;  %v1376_v25 = vpop.f32.mrb[65].mxu0 }
 0x824   :  { %v1377_v43 = vadd.f32 %v2687_v24, %v1376_v25  ;;  %v2293_v26 = vpop.f32.mrb[66].mxu0 }
 0x825   :  { %v1388_v44 = vadd.f32 %v2293_v26, %v2687_v24  ;;  %v1379_v29 = vpop.f32.mrb[67].mxu0  ;;  %v1441_v30 = vmax.f32 %v1385_v42, 0.0  ;;  %v2396_v42 = vld [vmem:[%s2831_s3 + $0x64] sm:$0xff]   ;;  %v2397_v26 = vld [vmem:[%s2831_s3 + $0x6c] sm:$0xff]  }
 0x826   :  { %v1380_v45 = vadd.f32 %v2687_v24, %v1379_v29  ;;  %v1439_v33 = vmax.f32 %v1377_v43, 0.0  ;;  %2327 = vmatpush3.bf16.msra.mxu0 %v2396_v42  ;;  %v2401_v29 = vld [vmem:[%s2831_s3 + $0x8c] sm:$0xff]  }
 0x827   :  { %v1442_v32 = vmax.f32 %v1388_v44, 0.0  ;;  %2328 = vmatprep.subr.bf16.mxu0 %v2413_v41  ;;  %v2398_v44 = vld [vmem:[%s2831_s3 + $0x74] sm:$0xff]  }
 0x828   :  { %v1440_v34 = vmax.f32 %v1380_v45, 0.0  ;;  %v1472_v45 = vpop.permute.xlu0 %1471 }
 0x829   :  { %v1456_v19 = vpack.c.bf16 %v1442_v32, %v1441_v30  ;;  %v1474_v30 = vpop.permute.xlu1 %1473  ;;  %v1512_v32 = vsel %vm443_vm2, %v2566_v63, %v1472_v45 }
 0x82a   :  { %v1455_v35 = vpack.c.bf16 %v1440_v34, %v1439_v33  ;;  %v2296_v36 = vpop.f32.mrb[68].mxu0  ;;  %2329 = vmatpush3.bf16.msra.mxu0 %v2397_v26 }
 0x82b   :  { %v1401_v46 = vadd.f32 %v2296_v36, %v2687_v24  ;;  %1497 = vrot.lane.b32.xlu1 %v1456_v19, %s2414_s11  ;;  %v1392_v31 = vpop.f32.mrb[69].mxu0  ;;  %2330 = vmatprep.subr.bf16.mxu0 %v2413_v41 }
 0x82c   :  { %v1393_v47 = vadd.f32 %v2687_v24, %v1392_v31  ;;  %v2297_v52 = vpop.f32.mrb[70].mxu0  ;;  %1495 = vrot.lane.b32.xlu0 %v1455_v35, %s2414_s11  ;;  %v1514_v35 = vsel %vm443_vm2, %v2564_v62, %v1474_v30 }
 0x82d   :  { %v1404_v50 = vadd.f32 %v2297_v52, %v2687_v24  ;;  %v1395_v53 = vpop.f32.mrb[71].mxu0  ;;  %v1445_v54 = vmax.f32 %v1401_v46, 0.0 }
 0x82e   :  { %v1396_v48 = vadd.f32 %v2687_v24, %v1395_v53  ;;  %v1443_v55 = vmax.f32 %v1393_v47, 0.0  ;;  %2331 = vmatpush3.bf16.msra.mxu0 %v2398_v44 }
 0x82f   :  { %v1446_v12 = vmax.f32 %v1404_v50, 0.0  ;;  %2332 = vmatprep.subr.bf16.mxu0 %v2413_v41 }
 0x830   :  { %v1444_v56 = vmax.f32 %v1396_v48, 0.0  ;;  %1475 = vrot.lane.b32.xlu0 %v2636_v4, %s2412_s27 }
 0x831   :  { %v1458_v57 = vpack.c.bf16 %v1446_v12, %v1445_v54 }
 0x832   :  { %v1457_v58 = vpack.c.bf16 %v1444_v56, %v1443_v55  ;;  %v2300_v59 = vpop.f32.mrb[72].mxu0 }
 0x833   :  { %v1417_v60 = vadd.f32 %v2300_v59, %v2687_v24  ;;  %v1408_v61 = vpop.f32.mrb[73].mxu0 }
 0x834   :  { %v1409_v0 = vadd.f32 %v2687_v24, %v1408_v61  ;;  %v2301_v1 = vpop.f32.mrb[74].mxu0  ;;  %1499 = vrot.lane.b32.xlu1 %v1457_v58, %s2414_s11  ;;  %1477 = vrot.lane.b32.xlu0 %v2634_v3, %s2412_s27 }
 0x835   :  { %v1420_v2 = vadd.f32 %v2301_v1, %v2687_v24  ;;  %v1411_v5 = vpop.f32.mrb[75].mxu0  ;;  %v1449_v4 = vmax.f32 %v1417_v60, 0.0 }
 0x836   :  { %v1412_v6 = vadd.f32 %v2687_v24, %v1411_v5  ;;  %v1447_v8 = vmax.f32 %v1409_v0, 0.0 }
 0x837   :  { %v1450_v7 = vmax.f32 %v1420_v2, 0.0  ;;  %v37_v2 = vld [vmem:[%s2835_s2] sm:$0xf] }
 0x838   :  { %v1448_v9 = vmax.f32 %v1412_v6, 0.0  ;;  %1501 = vrot.lane.b32.xlu1 %v1458_v57, %s2414_s11  ;;  %1479 = vrot.lane.b32.xlu0 %v2644_v22, %s2412_s27 }
 0x839   :  { %v1460_v10 = vpack.c.bf16 %v1450_v7, %v1449_v4 }
 0x83a   :  { %v1459_v11 = vpack.c.bf16 %v1448_v9, %v1447_v8  ;;  %v2304_v16 = vpop.f32.mrb[76].mxu0  ;;  %v2404_v9 = vld [vmem:[%s2831_s3 + $0xa4] sm:$0xff]  }
 0x83b   :  { %v1433_v17 = vadd.f32 %v2304_v16, %v2687_v24  ;;  %v1424_v3 = vpop.f32.mrb[77].mxu0  ;;  %v1937_v16 = vld [vmem:[%s2834_s4 + $0x6] ss:$0 sm:$0xff] }
 0x83c   :  { %v1425_v18 = vadd.f32 %v2687_v24, %v1424_v3  ;;  %v2305_v39 = vpop.f32.mrb[78].mxu0  ;;  %1503 = vrot.lane.b32.xlu1 %v1459_v11, %s2414_s11  ;;  %1481 = vrot.lane.b32.xlu0 %v2642_v21, %s2412_s27 }
 0x83d   :  { %v1436_v20 = vadd.f32 %v2305_v39, %v2687_v24  ;;  %v1427_v40 = vpop.f32.mrb[79].mxu0  ;;  %v1453_v23 = vmax.f32 %v1433_v17, 0.0 }
 0x83e   :  { %v1428_v22 = vadd.f32 %v2687_v24, %v1427_v40  ;;  %v1451_v25 = vmax.f32 %v1425_v18, 0.0 }
 0x83f   :  { %v1454_v15 = vmax.f32 %v1436_v20, 0.0 }
 0x840   :  { %v1452_v21 = vmax.f32 %v1428_v22, 0.0  ;;  %1505 = vrot.lane.b32.xlu1 %v1460_v10, %s2414_s11  ;;  %1483 = vrot.lane.b32.xlu0 %v2652_v38, %s2412_s27  ;;  %v2399_v38 = vld [vmem:[%s2831_s3 + $0x7c] sm:$0xff]   ;;  %v2405_v10 = vld [vmem:[%s2831_s3 + $0xac] ss:$0 sps:$4 sm:$0xff]  }
 0x841   :  { %v1462_v43 = vpack.c.bf16 %v1454_v15, %v1453_v23  ;;  %2333 = vmatpush3.bf16.msra.mxu0 %v2399_v38  ;;  %v1730_v11 = vsel %vm139_vm1, %v2405_v10, 0  ;;  %v2406_v23 = vld [vmem:[%s2831_s3 + $0xb0] sm:$0xff]   ;;  %v2407_v15 = vld [vmem:[%s2831_s3 + $0xb8] ss:$0 sps:$4 sm:$0xff]  }
 0x842   :  { %v1461_v24 = vpack.c.bf16 %v1452_v21, %v1451_v25  ;;  %2334 = vmatprep.subr.bf16.mxu0 %v2413_v41  ;;  %v1796_v42 = vsel %vm139_vm1, %v2407_v15, 0  ;;  %v1945_v25 = vld [vmem:[%s2834_s4 + $0x7] ss:$0 sm:$0xff] }
 0x844   :  { %1507 = vrot.lane.b32.xlu1 %v1461_v24, %s2414_s11  ;;  %1485 = vrot.lane.b32.xlu0 %v2650_v37, %s2412_s27  ;;  %v2400_v37 = vld [vmem:[%s2831_s3 + $0x84] sm:$0xff]  }
 0x845   :  { %2335 = vmatpush3.bf16.msra.mxu0 %v2400_v37 }
 0x846   :  { %2336 = vmatprep.subr.bf16.mxu0 %v2413_v41 }
 0x848   :  { %1509 = vrot.lane.b32.xlu1 %v1462_v43, %s2414_s11 }
 0x849   :  { %2337 = vmatpush3.bf16.msra.mxu0 %v2401_v29 }
 0x84a   :  { %2354 = vmatprep.subr.bf16.mxu0 %v2413_v41 }
 0x89d   :  { %v1498_v19 = vpop.permute.xlu1 %1497 }
 0x89e   :  { %v1496_v33 = vpop.permute.xlu0 %1495  ;;  %v1532_v46 = vsel %vm1527_vm4, %v1514_v35, %v1498_v19 }
 0x89f   :  { %v1529_v34 = vsel %vm1527_vm4, %v1512_v32, %v1496_v33 }
 0x8a0   :  { %2307 = vmatpush3.bf16.msra.mxu1 %v1529_v34 }
 0x8a1   :  { %2308 = vmatprep.subr.bf16.mxu1 %v2413_v41 }
 0x8a2   :  { %v1476_v36 = vpop.permute.xlu0 %1475 }
 0x8a3   :  { %v1516_v31 = vsel %vm443_vm2, %v2574_v14, %v1476_v36 }
 0x8a4   :  { %2309 = vmatpush3.bf16.msra.mxu1 %v1532_v46 }
 0x8a5   :  { %2310 = vmatprep.subr.bf16.mxu1 %v2413_v41 }
 0x8a6   :  { %v1500_v63 = vpop.permute.xlu1 %1499  ;;  %v1478_v47 = vpop.permute.xlu0 %1477 }
 0x8a7   :  { %v1535_v52 = vsel %vm1527_vm4, %v1516_v31, %v1500_v63  ;;  %v1518_v50 = vsel %vm443_vm2, %v2572_v13, %v1478_v47 }
 0x8a8   :  { %2311 = vmatpush3.bf16.msra.mxu1 %v1535_v52 }
 0x8a9   :  { %2312 = vmatprep.subr.bf16.mxu1 %v2413_v41 }
 0x8aa   :  { %v1502_v62 = vpop.permute.xlu1 %1501  ;;  %v1480_v53 = vpop.permute.xlu0 %1479 }
 0x8ab   :  { %v1538_v48 = vsel %vm1527_vm4, %v1518_v50, %v1502_v62  ;;  %v1520_v14 = vsel %vm443_vm2, %v2582_v28, %v1480_v53 }
 0x8ac   :  { %2313 = vmatpush3.bf16.msra.mxu1 %v1538_v48 }
 0x8ad   :  { %2314 = vmatprep.subr.bf16.mxu1 %v2413_v41 }
 0x8ae   :  { %v1504_v54 = vpop.permute.xlu1 %1503  ;;  %v1482_v12 = vpop.permute.xlu0 %1481 }
 0x8af   :  { %v1541_v55 = vsel %vm1527_vm4, %v1520_v14, %v1504_v54  ;;  %v1522_v13 = vsel %vm443_vm2, %v2580_v27, %v1482_v12 }
 0x8b0   :  { %2315 = vmatpush3.bf16.msra.mxu1 %v1541_v55 }
 0x8b1   :  { %2316 = vmatprep.subr.bf16.mxu1 %v2413_v41 }
 0x8b2   :  { %v1506_v56 = vpop.permute.xlu1 %1505  ;;  %v1484_v57 = vpop.permute.xlu0 %1483 }
 0x8b3   :  { %v1544_v58 = vsel %vm1527_vm4, %v1522_v13, %v1506_v56  ;;  %v1524_v28 = vsel %vm443_vm2, %v2590_v51, %v1484_v57  ;;  %v2402_v51 = vld [vmem:[%s2831_s3 + $0x94] sm:$0xff]  }
 0x8b4   :  { %2317 = vmatpush3.bf16.msra.mxu1 %v1544_v58 }
 0x8b5   :  { %2318 = vmatprep.subr.bf16.mxu1 %v2413_v41 }
 0x8b6   :  { %v1508_v59 = vpop.permute.xlu1 %1507  ;;  %v1486_v61 = vpop.permute.xlu0 %1485 }
 0x8b7   :  { %v1547_v60 = vsel %vm1527_vm4, %v1524_v28, %v1508_v59  ;;  %v1526_v27 = vsel %vm443_vm2, %v2588_v49, %v1486_v61  ;;  %v2403_v49 = vld [vmem:[%s2831_s3 + $0x9c] sm:$0xff]  }
 0x8b8   :  { %2319 = vmatpush3.bf16.msra.mxu1 %v1547_v60 }
 0x8b9   :  { %2320 = vmatprep.subr.bf16.mxu1 %v2413_v41 }
 0x8ba   :  { %v1510_v0 = vpop.permute.xlu1 %1509 }
 0x8bb   :  { %v1550_v1 = vsel %vm1527_vm4, %v1526_v27, %v1510_v0 }
 0x8bc   :  { %2321 = vmatpush3.bf16.msra.mxu1 %v1550_v1 }
 0x8bd   :  { %2342 = vmatprep.subr.bf16.mxu1 %v2413_v41 }
 0x8bf   :  { %2323 = vmatmul.mubr.bf16.vlgmr.msra.gmra.mrb[64].mxu1 %v37_v2 }
 0x8c0   :  { %2350 = vmatprep.mubr.msk.bf16.mxu1 %vm2415_vm3, %v2413_v41  ;;  %2343 = vmatpush3.bf16.msra.mxu1 %v2402_v51 }
 0x8c1   :  { %2344 = vmatprep.subr.bf16.mxu1 %v2413_v41 }
 0x8c4   :  { %2345 = vmatpush3.bf16.msra.mxu1 %v2403_v49 }
 0x8c5   :  { %2346 = vmatprep.subr.bf16.mxu1 %v2413_v41 }
 0x8c8   :  { %2347 = vmatpush3.bf16.msra.mxu1 %v2404_v9 }
 0x8c9   :  { %2348 = vmatprep.subr.bf16.mxu1 %v2413_v41 }
 0x8cc   :  { %2349 = vmatpush3.bf16.msra.mxu1 %v1730_v11 }
 0x992   :  { %v1586_v5 = vpop.f32.mrb[64].mxu1 }
 0x993   :  { %v1592_v6 = vpack.c.bf16 %v1586_v5, %v1586_v5  ;;  %v2324_v4 = vpop.f32.mrb[65].mxu1 }
 0x994   :  { %v1589_v7 = vpop.f32.mrb[66].mxu1 }
 0x995   :  { %v2325_v8 = vpop.f32.mrb[67].mxu1  ;;  %2339 = vmatmul.mubr.msk.bf16.vlgmr.msra.gmra.mrb[80].mxu0 %vm1646_vm5, %v1592_v6 }
 0x996   :  { %2358 = vmatprep.mubr.msk.bf16.mxu0 %vm2415_vm3, %v2413_v41  ;;  %2355 = vmatpush3.bf16.msra.mxu0 %v2406_v23 }
 0x997   :  { %2356 = vmatprep.subr.bf16.mxu0 %v2413_v41  ;;  %v1951_v41 = vld [vmem:[%s2834_s4 + $0x8] ss:$0 sm:$0xff] }
 0x99a   :  { %2357 = vmatpush3.bf16.msra.mxu0 %v1796_v42 }
 0xa68   :  { %v1684_v17 = vpop.f32.mrb[80].mxu0 }
 0xa69   :  { %v1685_v3 = vadd.f32 %v1937_v16, %v1684_v17  ;;  %v2340_v18 = vpop.f32.mrb[81].mxu0 }
 0xa6a   :  { %v1687_v39 = vpop.f32.mrb[82].mxu0 }
 0xa6b   :  { %v1690_v20 = vmax.f32 %v1685_v3, 0.0  ;;  %v2341_v40 = vpop.f32.mrb[83].mxu0 }
 0xa6d   :  { %v1691_v22 = vpack.c.bf16 %v1690_v20, %v1690_v20 }
 0xa6f   :  { %2351 = vmatmul.mubr.msk.bf16.vlgmr.msra.gmra.mrb[68].mxu1 %vm1725_vm6, %v1691_v22 }
 0xb42   :  { %v1766_v21 = vpop.f32.mrb[68].mxu1 }
 0xb43   :  { %v1767_v43 = vadd.f32 %v1945_v25, %v1766_v21  ;;  %v2352_v26 = vpop.f32.mrb[69].mxu1 }
 0xb44   :  { %v1769_v24 = vpop.f32.mrb[70].mxu1 }
 0xb45   :  { %v1772_v44 = vmax.f32 %v1767_v43, 0.0  ;;  %v2353_v38 = vpop.f32.mrb[71].mxu1 }
 0xb47   :  { %v1773_v37 = vpack.c.bf16 %v1772_v44, %v1772_v44 }
 0xb49   :  { %2359 = vmatmul.mubr.msk.bf16.vlgmr.msra.gmra.mrb[84].mxu0 %vm1791_vm7, %v1773_v37 }
 0xc1c   :  { %v1832_v29 = vpop.f32.mrb[84].mxu0 }
 0xc1d   :  { %v1833_v45 = vadd.f32 %v1951_v41, %v1832_v29  ;;  %v2360_v30 = vpop.f32.mrb[85].mxu0 }
 0xc1e   :  { %v1835_v32 = vpop.f32.mrb[86].mxu0 }
 0xc1f   :  { %1848 = vst [vmem:[%s2836_s5] sm:$0xff] %v1833_v45  ;;  %1838 = vmax.xlane.f32.xlu0 %v1833_v45  ;;  %v2361_v33 = vpop.f32.mrb[87].mxu0 }
 0xcac   :  { %v1839_v34 = vpop.xlane.xlu0 %1838 }
 0xcad   :  { %v1840_v19 = vsub.f32 %v1833_v45, %v1839_v34 }
 0xcaf   :  { %v1841_v35 = vmul.f32 1.442695, %v1840_v19 }
 0xcb1   :  { %2408 = vpow2.f32 %v1841_v35 }
 0xcbb   :  { %v2409_v36 = vpop.eup %2408 }
 0xcbc   :  { %1843 = vadd.xlane.f32.xlu1 %v2409_v36 }
 0xd49   :  { %v1844_v46 = vpop.xlane.xlu1 %1843 }
 0xd4a   :  { %2410 = vlog2.f32 %v1844_v46 }
 0xd54   :  { %v2411_v31 = vpop.eup %2410 }
 0xd55   :  { %v1846_v63 = vmul.f32 0.6931472, %v2411_v31 }
 0xd57   :  { %v1847_v47 = vsub.f32 %v1840_v19, %v1846_v63 }
 0xd59   :  { %1849 = vst [vmem:[%s2836_s5 + $0x8] sm:$0xff] %v1847_v47 }

</bundles_post_ra>
